<compile_context>
chip_gen: v5e
topology: v5e:2x2
jax: 0.10.0
libtpu: 0.0.40
codegen_flags: <defaults>
</compile_context>

<pallas_src>
import functools

import jax
import jax.numpy as jnp
from jax.experimental import pallas as pl
from jax.experimental.pallas import tpu as pltpu


def _rwkv_block_kernel(
    # activations / state
    x_ref, sh0_ref, sh1_ref, s_ref,
    # layer norms
    ln1w_ref, ln1b_ref, ln2w_ref, ln2b_ref,
    # time-mix token-shift params
    tmx_ref, tmw_ref, tmk_ref, tmv_ref, tmr_ref, tmg_ref,
    tmw1_ref, tmw2_ref,
    # decay
    td_ref, tdw1_ref, tdw2_ref,
    # bonus (pre-transposed) + helper 0/1 matrices
    faaaa_t_ref, amask_ref, rblk_ref,
    # attention linears (pre-transposed to [in, out], bf16)
    wr_ref, wk_ref, wv_ref, wg_ref, wo_ref,
    # group norm affine
    lnxw_ref, lnxb_ref,
    # ffn
    ftmk_ref, ftmr_ref,
    wfk_ref, wfr_ref, wfv_ref,
    # outputs
    x_out_ref, sh0_out_ref, sh1_out_ref, s_out_ref,
):
    eps = 1e-5
    f32 = jnp.float32
    bf16 = jnp.bfloat16

    x_in = x_ref[...]                       # [B, E]
    B, E = x_in.shape
    S = s_ref.shape[1]                      # head size
    d_mix = tmw1_ref.shape[1] // 5

    def layer_norm(v, w, b):
        mu = jnp.mean(v, axis=-1, keepdims=True)
        var = jnp.mean(jnp.square(v - mu), axis=-1, keepdims=True)
        return (v - mu) * jax.lax.rsqrt(var + eps) * w + b

    def sigmoid(v):
        # 1 / (1 + exp(-v)) with the divide on the EUP reciprocal slot.
        return pl.reciprocal(1.0 + jnp.exp(-v), approx=True)

    def mxu(a, w_ref_):
        # single-pass bf16 MXU matmul, f32 accumulation
        return jnp.dot(a.astype(bf16), w_ref_[...], preferred_element_type=f32)

    # ---------------- time mixing ----------------
    x1 = layer_norm(x_in, ln1w_ref[...], ln1b_ref[...])
    sx = sh1_ref[...] - x1

    xxx = x1 + sx * tmx_ref[...]
    t5 = jnp.tanh(jnp.dot(xxx, tmw1_ref[...], preferred_element_type=f32))   # [B, 5*d_mix]
    # TODO(synk): the 5 small projections below could be a single batched contraction.
    mixes = []
    for j in range(5):
        mixes.append(jnp.dot(t5[:, j * d_mix:(j + 1) * d_mix], tmw2_ref[j],
                             preferred_element_type=f32))
    mw_, mk_, mv_, mr_, mg_ = mixes

    xw = x1 + sx * (tmw_ref[...] + mw_)
    xk = x1 + sx * (tmk_ref[...] + mk_)
    xv = x1 + sx * (tmv_ref[...] + mv_)
    xr = x1 + sx * (tmr_ref[...] + mr_)
    xg = x1 + sx * (tmg_ref[...] + mg_)

    w_dec = td_ref[...] + jnp.dot(
        jnp.tanh(jnp.dot(xw, tdw1_ref[...], preferred_element_type=f32)),
        tdw2_ref[...], preferred_element_type=f32)
    w_dec = jnp.exp(-jnp.exp(w_dec))                       # [B, E] per-channel decay

    r = mxu(xr, wr_ref)                                    # [B, E]
    k = mxu(xk, wk_ref)
    v = mxu(xv, wv_ref)
    gl = mxu(xg, wg_ref)
    g = gl * sigmoid(gl)                                   # SiLU gate

    # -------- WKV recurrence, vectorized in the head-major [B, S, E] layout --------
    # Need T(x)[b, s1, h*S+s2] = x[b, h*S+s1] for x in {k, decay, r}:
    #   mask with A[s1, c] = (c % S == s1), then one block-diagonal 0/1 matmul
    #   (Rblk[c, e] = (c//S == e//S)).  Everything stays lane-dense on E.
    a_mask = amask_ref[...]                                # [S, E] f32
    r_blk = rblk_ref[...]                                  # [E, E] bf16 (0/1)
    kwr = jnp.concatenate([k, w_dec, r], axis=0)           # [3B, E]
    z = kwr[:, None, :] * a_mask[None, :, :]               # [3B, S, E]
    zt = jnp.dot(z.reshape(3 * B * S, E).astype(bf16), r_blk,
                 preferred_element_type=f32).reshape(3 * B, S, E)
    kT, wT, rT = zt[:B], zt[B:2 * B], zt[2 * B:]           # each [B, S, E]

    s_state = s_ref[...]                                   # [B, S, E] head-major state
    u_T = faaaa_t_ref[...]                                 # [S, E] bonus, pre-transposed
    a = kT * v[:, None, :]                                 # k (x) v outer products
    s_new = a + wT * s_state                               # s' = a + w * s
    wkv = jnp.sum(rT * (u_T[None, :, :] * a + s_state), axis=1)   # [B, E]
    s_out_ref[...] = s_new                                 # single lane-dense store

    # -------- per-head group norm, batched via the same block-diagonal matmul --------
    inv_s = 1.0 / S
    mean_h = jnp.dot(wkv.astype(bf16), r_blk, preferred_element_type=f32) * inv_s
    d = wkv - mean_h
    var_h = jnp.dot(jnp.square(d).astype(bf16), r_blk, preferred_element_type=f32) * inv_s
    x_att = (d * jax.lax.rsqrt(var_h + eps) * lnxw_ref[...] + lnxb_ref[...]) * g
    x2 = x_in + mxu(x_att, wo_ref)

    # ---------------- channel mixing ----------------
    x2n = layer_norm(x2, ln2w_ref[...], ln2b_ref[...])
    sx2 = sh0_ref[...] - x2n
    xk2 = x2n + sx2 * ftmk_ref[...]
    xr2 = x2n + sx2 * ftmr_ref[...]
    rr = sigmoid(mxu(xr2, wfr_ref))
    kk = jnp.square(jnp.maximum(mxu(xk2, wfk_ref), 0.0))
    ffn_out = rr * mxu(kk, wfv_ref)

    x_out_ref[...] = x2 + ffn_out
    sh0_out_ref[...] = x2n
    sh1_out_ref[...] = x1


def rwkv_block_forward(x, state, layer_idx, params, n_head):
    """Functional equivalent of RWKV_Block.forward(x, state, i) -> (x, state)."""
    B, E = x.shape
    H = n_head
    S = E // H
    base = (2 + S) * layer_idx
    p = params
    bf16 = jnp.bfloat16
    f32 = jnp.float32

    sh0 = state[:, base + 0, :]
    sh1 = state[:, base + 1, :]
    # HBM keeps torch's flat [B, S, E] view of the [B, H, S, S] WKV state; the kernel
    # wants the head-major layout (sublane = s1, lane = h*S + s2), so permute here.
    slab = state[:, base + 2: base + 2 + S, :]
    s_hm = slab.reshape(B, H, S, S).transpose(0, 2, 1, 3).reshape(B, S, E)

    row = lambda a: a.reshape(1, E)
    big = lambda name: p[name].T.astype(bf16)              # [in, out] bf16 weights

    lanes = jnp.arange(E, dtype=jnp.int32)
    a_mask = (lanes[None, :] % S ==
              jnp.arange(S, dtype=jnp.int32)[:, None]).astype(f32)        # [S, E]
    r_blk = (lanes[:, None] // S == lanes[None, :] // S).astype(bf16)     # [E, E]
    faaaa_t = jnp.repeat(p['att.time_faaaa'].reshape(H, S).T, S, axis=1)  # [S, E]

    inputs = [
        x, sh0, sh1, s_hm,
        row(p['ln1.weight']), row(p['ln1.bias']),
        row(p['ln2.weight']), row(p['ln2.bias']),
        row(p['att.time_maa_x']), row(p['att.time_maa_w']),
        row(p['att.time_maa_k']), row(p['att.time_maa_v']),
        row(p['att.time_maa_r']), row(p['att.time_maa_g']),
        p['att.time_maa_w1'], p['att.time_maa_w2'],
        row(p['att.time_decay']), p['att.time_decay_w1'], p['att.time_decay_w2'],
        faaaa_t, a_mask, r_blk,
        big('att.receptance.weight'), big('att.key.weight'),
        big('att.value.weight'), big('att.gate.weight'), big('att.output.weight'),
        row(p['att.ln_x.weight']), row(p['att.ln_x.bias']),
        row(p['ffn.time_maa_k']), row(p['ffn.time_maa_r']),
        big('ffn.key.weight'), big('ffn.receptance.weight'), big('ffn.value.weight'),
    ]

    vmem = pl.BlockSpec(memory_space=pltpu.MemorySpace.VMEM)
    x_new, sh0_new, sh1_new, s_new_hm = pl.pallas_call(
        _rwkv_block_kernel,
        out_shape=(
            jax.ShapeDtypeStruct((B, E), f32),
            jax.ShapeDtypeStruct((B, E), f32),
            jax.ShapeDtypeStruct((B, E), f32),
            jax.ShapeDtypeStruct((B, S, E), f32),
        ),
        in_specs=[vmem] * len(inputs),
        out_specs=(vmem, vmem, vmem, vmem),
        compiler_params=pltpu.CompilerParams(vmem_limit_bytes=64 * 1024 * 1024),
    )(*inputs)

    # Permute s' back to the flat torch layout and update only this layer's rows.
    s_new = s_new_hm.reshape(B, S, H, S).transpose(0, 2, 1, 3).reshape(B, S, E)
    new_rows = jnp.concatenate(
        [sh0_new[:, None, :], sh1_new[:, None, :], s_new], axis=1)
    # With `state` donated at the jit boundary this update happens in place
    # (no full-state HBM copy per layer).
    state_new = jax.lax.dynamic_update_slice(state, new_rows, (0, base, 0))
    return x_new, state_new


def _bf16_mm(a, w_t):
    """Reference mirror of the kernel's bf16 MXU matmul policy (same rounded weights)."""
    return jnp.dot(a.astype(jnp.bfloat16), w_t.astype(jnp.bfloat16),
                   preferred_element_type=jnp.float32)


def rwkv_block_reference(x, state, layer_idx, params, n_head):
    """Plain-JAX mirror of the PyTorch forward, for verification."""
    p = params
    B, E = x.shape
    H = n_head
    S = E // H
    eps = 1e-5

    def ln(v, w, b):
        mu = v.mean(axis=1, keepdims=True)
        var = ((v - mu) ** 2).mean(axis=1, keepdims=True)
        return (v - mu) / jnp.sqrt(var + eps) * w + b

    base = (2 + S) * layer_idx

    # time mixing
    xt = ln(x, p['ln1.weight'], p['ln1.bias'])
    sx = state[:, base + 1] - xt
    state = state.at[:, base + 1].set(xt)
    xxx = xt + sx * p['att.time_maa_x']
    xxx = jnp.tanh(xxx @ p['att.time_maa_w1']).reshape(B, 5, 1, -1)
    xxx = jnp.matmul(xxx, p['att.time_maa_w2']).reshape(B, 5, -1)
    mw, mk, mv, mr, mg = [xxx[:, j] for j in range(5)]
    xw = xt + sx * (p['att.time_maa_w'] + mw)
    xk = xt + sx * (p['att.time_maa_k'] + mk)
    xv = xt + sx * (p['att.time_maa_v'] + mv)
    xr = xt + sx * (p['att.time_maa_r'] + mr)
    xg = xt + sx * (p['att.time_maa_g'] + mg)
    w = p['att.time_decay'] + jnp.tanh(xw @ p['att.time_decay_w1']) @ p['att.time_decay_w2']
    w = jnp.exp(-jnp.exp(w.reshape(B, H, S, 1)))
    r = _bf16_mm(xr, p['att.receptance.weight'].T).reshape(B, H, 1, S)
    k = _bf16_mm(xk, p['att.key.weight'].T).reshape(B, H, S, 1)
    v = _bf16_mm(xv, p['att.value.weight'].T).reshape(B, H, 1, S)
    gl = _bf16_mm(xg, p['att.gate.weight'].T)
    g = gl * jax.nn.sigmoid(gl)
    s = state[:, base + 2: base + 2 + S, :].reshape(B, H, S, S)
    a = jnp.matmul(k, v)
    xo = jnp.matmul(r, p['att.time_faaaa'] * a + s)
    s = a + w * s
    state = state.at[:, base + 2: base + 2 + S, :].set(s.reshape(B, S, E))
    xo = xo.reshape(B, E)
    xh = xo.reshape(B, H, S)
    mu = xh.mean(axis=2, keepdims=True)
    var = ((xh - mu) ** 2).mean(axis=2, keepdims=True)
    xn = ((xh - mu) / jnp.sqrt(var + eps)).reshape(B, E)
    xo = (xn * p['att.ln_x.weight'] + p['att.ln_x.bias']) * g
    x = x + _bf16_mm(xo, p['att.output.weight'].T)

    # channel mixing
    xc = ln(x, p['ln2.weight'], p['ln2.bias'])
    sx = state[:, base + 0] - xc
    state = state.at[:, base + 0].set(xc)
    xk = xc + sx * p['ffn.time_maa_k']
    xr = xc + sx * p['ffn.time_maa_r']
    rr = jax.nn.sigmoid(_bf16_mm(xr, p['ffn.receptance.weight'].T))
    kk = jnp.maximum(_bf16_mm(xk, p['ffn.key.weight'].T), 0.0) ** 2
    out = rr * _bf16_mm(kk, p['ffn.value.weight'].T)
    return x + out, state


def init_params(key, n_embd, n_head, d_mix, d_decay):
    E = n_embd
    H = n_head
    S = E // H
    keys = iter(jax.random.split(key, 40))

    def nrm(shape, scale):
        return (scale * jax.random.normal(next(keys), shape)).astype(jnp.float32)

    p = {}
    p['ln1.weight'] = 1.0 + nrm((E,), 0.1)
    p['ln1.bias'] = nrm((E,), 0.1)
    p['ln2.weight'] = 1.0 + nrm((E,), 0.1)
    p['ln2.bias'] = nrm((E,), 0.1)
    for name in ['x', 'w', 'k', 'v', 'r', 'g']:
        p[f'att.time_maa_{name}'] = 0.5 + nrm((E,), 0.1)
    p['att.time_maa_w1'] = nrm((E, 5 * d_mix), 0.1)
    p['att.time_maa_w2'] = nrm((5, d_mix, E), 0.1)
    p['att.time_decay'] = nrm((E,), 0.5)
    p['att.time_decay_w1'] = nrm((E, d_decay), 0.1)
    p['att.time_decay_w2'] = nrm((d_decay, E), 0.1)
    p['att.time_faaaa'] = nrm((H, S, 1), 0.3)
    for name in ['receptance', 'key', 'value', 'gate', 'output']:
        p[f'att.{name}.weight'] = nrm((E, E), 1.0 / (E ** 0.5))
    p['att.ln_x.weight'] = 1.0 + nrm((E,), 0.1)
    p['att.ln_x.bias'] = nrm((E,), 0.1)
    p['ffn.time_maa_k'] = 0.5 + nrm((E,), 0.1)
    p['ffn.time_maa_r'] = 0.5 + nrm((E,), 0.1)
    for name in ['key', 'receptance', 'value']:
        p[f'ffn.{name}.weight'] = nrm((E, E), 1.0 / (E ** 0.5))
    return p


if __name__ == "__main__":
    B = 2
    n_embd = 32
    n_head = 4
    head_size = n_embd // n_head
    d_mix = 16
    d_decay = 32
    n_layers = 2
    layer_idx = 1          # the "i" time index of the module

    key = jax.random.PRNGKey(0)
    kx, ks, kp = jax.random.split(key, 3)
    params = init_params(kp, n_embd, n_head, d_mix, d_decay)
    x = 0.5 * jax.random.normal(kx, (B, n_embd), dtype=jnp.float32)
    state = 0.5 * jax.random.normal(
        ks, (B, (2 + head_size) * n_layers, n_embd), dtype=jnp.float32)

    # Reference first: the kernel call below donates `state`.
    x_ref, state_ref = rwkv_block_reference(x, state, layer_idx, params, n_head)
    x_ref, state_ref = jax.block_until_ready((x_ref, state_ref))

    @functools.partial(jax.jit, donate_argnums=(1,))
    def fwd(x_, state_):
        return rwkv_block_forward(x_, state_, layer_idx, params, n_head)

    x_out, state_out = fwd(x, state)
    x_out, state_out = jax.block_until_ready((x_out, state_out))

    # bf16-MXU tolerance (both kernel and reference use bf16 weights/activations
    # for the large projections).
    err_x = float(jnp.max(jnp.abs(x_out - x_ref)))
    err_s = float(jnp.max(jnp.abs(state_out - state_ref)))
    assert jnp.allclose(x_out, x_ref, rtol=2e-2, atol=2e-2), f"x mismatch, max |err| = {err_x}"
    assert jnp.allclose(state_out, state_ref, rtol=2e-2, atol=2e-2), f"state mismatch, max |err| = {err_s}"

    print("KERNEL_OK")
</pallas_src>

<mosaic_0001>
module attributes {stable_mosaic.version = 11 : i64} {
  func.func @_rwkv_block_kernel(%arg0: memref<2x32xf32, #tpu.memory_space<vmem>>, %arg1: memref<2x32xf32, #tpu.memory_space<vmem>>, %arg2: memref<2x32xf32, #tpu.memory_space<vmem>>, %arg3: memref<2x8x32xf32, #tpu.memory_space<vmem>>, %arg4: memref<1x32xf32, #tpu.memory_space<vmem>>, %arg5: memref<1x32xf32, #tpu.memory_space<vmem>>, %arg6: memref<1x32xf32, #tpu.memory_space<vmem>>, %arg7: memref<1x32xf32, #tpu.memory_space<vmem>>, %arg8: memref<1x32xf32, #tpu.memory_space<vmem>>, %arg9: memref<1x32xf32, #tpu.memory_space<vmem>>, %arg10: memref<1x32xf32, #tpu.memory_space<vmem>>, %arg11: memref<1x32xf32, #tpu.memory_space<vmem>>, %arg12: memref<1x32xf32, #tpu.memory_space<vmem>>, %arg13: memref<1x32xf32, #tpu.memory_space<vmem>>, %arg14: memref<32x80xf32, #tpu.memory_space<vmem>>, %arg15: memref<5x16x32xf32, #tpu.memory_space<vmem>>, %arg16: memref<1x32xf32, #tpu.memory_space<vmem>>, %arg17: memref<32x32xf32, #tpu.memory_space<vmem>>, %arg18: memref<32x32xf32, #tpu.memory_space<vmem>>, %arg19: memref<8x32xf32, #tpu.memory_space<vmem>>, %arg20: memref<8x32xf32, #tpu.memory_space<vmem>>, %arg21: memref<32x32xbf16, #tpu.memory_space<vmem>>, %arg22: memref<32x32xbf16, #tpu.memory_space<vmem>>, %arg23: memref<32x32xbf16, #tpu.memory_space<vmem>>, %arg24: memref<32x32xbf16, #tpu.memory_space<vmem>>, %arg25: memref<32x32xbf16, #tpu.memory_space<vmem>>, %arg26: memref<32x32xbf16, #tpu.memory_space<vmem>>, %arg27: memref<1x32xf32, #tpu.memory_space<vmem>>, %arg28: memref<1x32xf32, #tpu.memory_space<vmem>>, %arg29: memref<1x32xf32, #tpu.memory_space<vmem>>, %arg30: memref<1x32xf32, #tpu.memory_space<vmem>>, %arg31: memref<32x32xbf16, #tpu.memory_space<vmem>>, %arg32: memref<32x32xbf16, #tpu.memory_space<vmem>>, %arg33: memref<32x32xbf16, #tpu.memory_space<vmem>>, %arg34: memref<2x32xf32, #tpu.memory_space<vmem>>, %arg35: memref<2x32xf32, #tpu.memory_space<vmem>>, %arg36: memref<2x32xf32, #tpu.memory_space<vmem>>, %arg37: memref<2x8x32xf32, #tpu.memory_space<vmem>>) attributes {dimension_semantics = [], scalar_prefetch = 0 : i64, scratch_operands = 0 : i64, tpu.core_type = #tpu.core_type<tc>} {
    %c0 = arith.constant 0 : index
    %c0_0 = arith.constant 0 : index
    %0 = vector.load %arg0[%c0, %c0_0] : memref<2x32xf32, #tpu.memory_space<vmem>>, vector<2x32xf32>
    %c0_1 = arith.constant 0 : index
    %c0_2 = arith.constant 0 : index
    %1 = vector.load %arg4[%c0_1, %c0_2] : memref<1x32xf32, #tpu.memory_space<vmem>>, vector<1x32xf32>
    %c0_3 = arith.constant 0 : index
    %c0_4 = arith.constant 0 : index
    %2 = vector.load %arg5[%c0_3, %c0_4] : memref<1x32xf32, #tpu.memory_space<vmem>>, vector<1x32xf32>
    %cst = arith.constant dense<0.000000e+00> : vector<2xf32>
    %3 = vector.multi_reduction <add>, %0, %cst [1] : vector<2x32xf32> to vector<2xf32>
    %4 = vector.shape_cast %3 : vector<2xf32> to vector<2x1xf32>
    %cst_5 = arith.constant 3.200000e+01 : f32
    %5 = vector.broadcast %cst_5 : f32 to vector<2x1xf32>
    %6 = arith.divf %4, %5 : vector<2x1xf32>
    %7 = vector.broadcast %6 : vector<2x1xf32> to vector<2x32xf32>
    %8 = arith.subf %0, %7 : vector<2x32xf32>
    %9 = arith.mulf %8, %8 : vector<2x32xf32>
    %cst_6 = arith.constant dense<0.000000e+00> : vector<2xf32>
    %10 = vector.multi_reduction <add>, %9, %cst_6 [1] : vector<2x32xf32> to vector<2xf32>
    %11 = vector.shape_cast %10 : vector<2xf32> to vector<2x1xf32>
    %cst_7 = arith.constant 3.200000e+01 : f32
    %12 = vector.broadcast %cst_7 : f32 to vector<2x1xf32>
    %13 = arith.divf %11, %12 : vector<2x1xf32>
    %14 = vector.broadcast %6 : vector<2x1xf32> to vector<2x32xf32>
    %15 = arith.subf %0, %14 : vector<2x32xf32>
    %cst_8 = arith.constant 9.99999974E-6 : f32
    %16 = vector.broadcast %cst_8 : f32 to vector<2x1xf32>
    %17 = arith.addf %13, %16 : vector<2x1xf32>
    %18 = math.rsqrt %17 : vector<2x1xf32>
    %19 = vector.broadcast %18 : vector<2x1xf32> to vector<2x32xf32>
    %20 = arith.mulf %15, %19 : vector<2x32xf32>
    %21 = vector.broadcast %1 : vector<1x32xf32> to vector<2x32xf32>
    %22 = arith.mulf %20, %21 : vector<2x32xf32>
    %23 = vector.broadcast %2 : vector<1x32xf32> to vector<2x32xf32>
    %24 = arith.addf %22, %23 : vector<2x32xf32>
    %c0_9 = arith.constant 0 : index
    %c0_10 = arith.constant 0 : index
    %25 = vector.load %arg2[%c0_9, %c0_10] : memref<2x32xf32, #tpu.memory_space<vmem>>, vector<2x32xf32>
    %26 = arith.subf %25, %24 : vector<2x32xf32>
    %c0_11 = arith.constant 0 : index
    %c0_12 = arith.constant 0 : index
    %27 = vector.load %arg8[%c0_11, %c0_12] : memref<1x32xf32, #tpu.memory_space<vmem>>, vector<1x32xf32>
    %28 = vector.broadcast %27 : vector<1x32xf32> to vector<2x32xf32>
    %29 = arith.mulf %26, %28 : vector<2x32xf32>
    %30 = arith.addf %24, %29 : vector<2x32xf32>
    %c0_13 = arith.constant 0 : index
    %c0_14 = arith.constant 0 : index
    %31 = vector.load %arg14[%c0_13, %c0_14] : memref<32x80xf32, #tpu.memory_space<vmem>>, vector<32x80xf32>
    %cst_15 = arith.constant dense<0.000000e+00> : vector<2x80xf32>
    %32 = tpu.matmul %30, %31, %cst_15 {dimension_numbers = #tpu.dot_dimension_numbers<[1], [0], [0], [1], [0, 0, 1, 1], [], []>} : vector<2x32xf32>, vector<32x80xf32>, vector<2x80xf32> -> vector<2x80xf32>
    %33 = math.tanh %32 : vector<2x80xf32>
    %34 = vector.extract_strided_slice %33 {offsets = [0, 0], sizes = [2, 16], strides = [1, 1]} : vector<2x80xf32> to vector<2x16xf32>
    %c0_16 = arith.constant 0 : index
    %c0_17 = arith.constant 0 : index
    %c0_18 = arith.constant 0 : index
    %35 = vector.load %arg15[%c0_16, %c0_17, %c0_18] : memref<5x16x32xf32, #tpu.memory_space<vmem>>, vector<1x16x32xf32>
    %36 = vector.shape_cast %35 : vector<1x16x32xf32> to vector<16x32xf32>
    %cst_19 = arith.constant dense<0.000000e+00> : vector<2x32xf32>
    %37 = tpu.matmul %34, %36, %cst_19 {dimension_numbers = #tpu.dot_dimension_numbers<[1], [0], [0], [1], [0, 0, 1, 1], [], []>} : vector<2x16xf32>, vector<16x32xf32>, vector<2x32xf32> -> vector<2x32xf32>
    %38 = vector.extract_strided_slice %33 {offsets = [0, 16], sizes = [2, 16], strides = [1, 1]} : vector<2x80xf32> to vector<2x16xf32>
    %c1 = arith.constant 1 : index
    %c0_20 = arith.constant 0 : index
    %c0_21 = arith.constant 0 : index
    %39 = vector.load %arg15[%c1, %c0_20, %c0_21] : memref<5x16x32xf32, #tpu.memory_space<vmem>>, vector<1x16x32xf32>
    %40 = vector.shape_cast %39 : vector<1x16x32xf32> to vector<16x32xf32>
    %cst_22 = arith.constant dense<0.000000e+00> : vector<2x32xf32>
    %41 = tpu.matmul %38, %40, %cst_22 {dimension_numbers = #tpu.dot_dimension_numbers<[1], [0], [0], [1], [0, 0, 1, 1], [], []>} : vector<2x16xf32>, vector<16x32xf32>, vector<2x32xf32> -> vector<2x32xf32>
    %42 = vector.extract_strided_slice %33 {offsets = [0, 32], sizes = [2, 16], strides = [1, 1]} : vector<2x80xf32> to vector<2x16xf32>
    %c2 = arith.constant 2 : index
    %c0_23 = arith.constant 0 : index
    %c0_24 = arith.constant 0 : index
    %43 = vector.load %arg15[%c2, %c0_23, %c0_24] : memref<5x16x32xf32, #tpu.memory_space<vmem>>, vector<1x16x32xf32>
    %44 = vector.shape_cast %43 : vector<1x16x32xf32> to vector<16x32xf32>
    %cst_25 = arith.constant dense<0.000000e+00> : vector<2x32xf32>
    %45 = tpu.matmul %42, %44, %cst_25 {dimension_numbers = #tpu.dot_dimension_numbers<[1], [0], [0], [1], [0, 0, 1, 1], [], []>} : vector<2x16xf32>, vector<16x32xf32>, vector<2x32xf32> -> vector<2x32xf32>
    %46 = vector.extract_strided_slice %33 {offsets = [0, 48], sizes = [2, 16], strides = [1, 1]} : vector<2x80xf32> to vector<2x16xf32>
    %c3 = arith.constant 3 : index
    %c0_26 = arith.constant 0 : index
    %c0_27 = arith.constant 0 : index
    %47 = vector.load %arg15[%c3, %c0_26, %c0_27] : memref<5x16x32xf32, #tpu.memory_space<vmem>>, vector<1x16x32xf32>
    %48 = vector.shape_cast %47 : vector<1x16x32xf32> to vector<16x32xf32>
    %cst_28 = arith.constant dense<0.000000e+00> : vector<2x32xf32>
    %49 = tpu.matmul %46, %48, %cst_28 {dimension_numbers = #tpu.dot_dimension_numbers<[1], [0], [0], [1], [0, 0, 1, 1], [], []>} : vector<2x16xf32>, vector<16x32xf32>, vector<2x32xf32> -> vector<2x32xf32>
    %50 = vector.extract_strided_slice %33 {offsets = [0, 64], sizes = [2, 16], strides = [1, 1]} : vector<2x80xf32> to vector<2x16xf32>
    %c4 = arith.constant 4 : index
    %c0_29 = arith.constant 0 : index
    %c0_30 = arith.constant 0 : index
    %51 = vector.load %arg15[%c4, %c0_29, %c0_30] : memref<5x16x32xf32, #tpu.memory_space<vmem>>, vector<1x16x32xf32>
    %52 = vector.shape_cast %51 : vector<1x16x32xf32> to vector<16x32xf32>
    %cst_31 = arith.constant dense<0.000000e+00> : vector<2x32xf32>
    %53 = tpu.matmul %50, %52, %cst_31 {dimension_numbers = #tpu.dot_dimension_numbers<[1], [0], [0], [1], [0, 0, 1, 1], [], []>} : vector<2x16xf32>, vector<16x32xf32>, vector<2x32xf32> -> vector<2x32xf32>
    %c0_32 = arith.constant 0 : index
    %c0_33 = arith.constant 0 : index
    %54 = vector.load %arg9[%c0_32, %c0_33] : memref<1x32xf32, #tpu.memory_space<vmem>>, vector<1x32xf32>
    %55 = vector.broadcast %54 : vector<1x32xf32> to vector<2x32xf32>
    %56 = arith.addf %55, %37 : vector<2x32xf32>
    %57 = arith.mulf %26, %56 : vector<2x32xf32>
    %58 = arith.addf %24, %57 : vector<2x32xf32>
    %c0_34 = arith.constant 0 : index
    %c0_35 = arith.constant 0 : index
    %59 = vector.load %arg10[%c0_34, %c0_35] : memref<1x32xf32, #tpu.memory_space<vmem>>, vector<1x32xf32>
    %60 = vector.broadcast %59 : vector<1x32xf32> to vector<2x32xf32>
    %61 = arith.addf %60, %41 : vector<2x32xf32>
    %62 = arith.mulf %26, %61 : vector<2x32xf32>
    %63 = arith.addf %24, %62 : vector<2x32xf32>
    %c0_36 = arith.constant 0 : index
    %c0_37 = arith.constant 0 : index
    %64 = vector.load %arg11[%c0_36, %c0_37] : memref<1x32xf32, #tpu.memory_space<vmem>>, vector<1x32xf32>
    %65 = vector.broadcast %64 : vector<1x32xf32> to vector<2x32xf32>
    %66 = arith.addf %65, %45 : vector<2x32xf32>
    %67 = arith.mulf %26, %66 : vector<2x32xf32>
    %68 = arith.addf %24, %67 : vector<2x32xf32>
    %c0_38 = arith.constant 0 : index
    %c0_39 = arith.constant 0 : index
    %69 = vector.load %arg12[%c0_38, %c0_39] : memref<1x32xf32, #tpu.memory_space<vmem>>, vector<1x32xf32>
    %70 = vector.broadcast %69 : vector<1x32xf32> to vector<2x32xf32>
    %71 = arith.addf %70, %49 : vector<2x32xf32>
    %72 = arith.mulf %26, %71 : vector<2x32xf32>
    %73 = arith.addf %24, %72 : vector<2x32xf32>
    %c0_40 = arith.constant 0 : index
    %c0_41 = arith.constant 0 : index
    %74 = vector.load %arg13[%c0_40, %c0_41] : memref<1x32xf32, #tpu.memory_space<vmem>>, vector<1x32xf32>
    %75 = vector.broadcast %74 : vector<1x32xf32> to vector<2x32xf32>
    %76 = arith.addf %75, %53 : vector<2x32xf32>
    %77 = arith.mulf %26, %76 : vector<2x32xf32>
    %78 = arith.addf %24, %77 : vector<2x32xf32>
    %c0_42 = arith.constant 0 : index
    %c0_43 = arith.constant 0 : index
    %79 = vector.load %arg16[%c0_42, %c0_43] : memref<1x32xf32, #tpu.memory_space<vmem>>, vector<1x32xf32>
    %c0_44 = arith.constant 0 : index
    %c0_45 = arith.constant 0 : index
    %80 = vector.load %arg17[%c0_44, %c0_45] : memref<32x32xf32, #tpu.memory_space<vmem>>, vector<32x32xf32>
    %cst_46 = arith.constant dense<0.000000e+00> : vector<2x32xf32>
    %81 = tpu.matmul %58, %80, %cst_46 {dimension_numbers = #tpu.dot_dimension_numbers<[1], [0], [0], [1], [0, 0, 1, 1], [], []>} : vector<2x32xf32>, vector<32x32xf32>, vector<2x32xf32> -> vector<2x32xf32>
    %82 = math.tanh %81 : vector<2x32xf32>
    %c0_47 = arith.constant 0 : index
    %c0_48 = arith.constant 0 : index
    %83 = vector.load %arg18[%c0_47, %c0_48] : memref<32x32xf32, #tpu.memory_space<vmem>>, vector<32x32xf32>
    %cst_49 = arith.constant dense<0.000000e+00> : vector<2x32xf32>
    %84 = tpu.matmul %82, %83, %cst_49 {dimension_numbers = #tpu.dot_dimension_numbers<[1], [0], [0], [1], [0, 0, 1, 1], [], []>} : vector<2x32xf32>, vector<32x32xf32>, vector<2x32xf32> -> vector<2x32xf32>
    %85 = vector.broadcast %79 : vector<1x32xf32> to vector<2x32xf32>
    %86 = arith.addf %85, %84 : vector<2x32xf32>
    %87 = math.exp %86 : vector<2x32xf32>
    %cst_50 = arith.constant 0.000000e+00 : f32
    %88 = vector.broadcast %cst_50 : f32 to vector<2x32xf32>
    %89 = arith.subf %88, %87 : vector<2x32xf32>
    %90 = math.exp %89 : vector<2x32xf32>
    %91 = arith.truncf %73 : vector<2x32xf32> to vector<2x32xbf16>
    %c0_51 = arith.constant 0 : index
    %c0_52 = arith.constant 0 : index
    %92 = vector.load %arg22[%c0_51, %c0_52] : memref<32x32xbf16, #tpu.memory_space<vmem>>, vector<32x32xbf16>
    %cst_53 = arith.constant dense<0.000000e+00> : vector<2x32xf32>
    %93 = tpu.matmul %91, %92, %cst_53 {dimension_numbers = #tpu.dot_dimension_numbers<[1], [0], [0], [1], [0, 0, 1, 1], [], []>} : vector<2x32xbf16>, vector<32x32xbf16>, vector<2x32xf32> -> vector<2x32xf32>
    %94 = arith.truncf %63 : vector<2x32xf32> to vector<2x32xbf16>
    %c0_54 = arith.constant 0 : index
    %c0_55 = arith.constant 0 : index
    %95 = vector.load %arg23[%c0_54, %c0_55] : memref<32x32xbf16, #tpu.memory_space<vmem>>, vector<32x32xbf16>
    %cst_56 = arith.constant dense<0.000000e+00> : vector<2x32xf32>
    %96 = tpu.matmul %94, %95, %cst_56 {dimension_numbers = #tpu.dot_dimension_numbers<[1], [0], [0], [1], [0, 0, 1, 1], [], []>} : vector<2x32xbf16>, vector<32x32xbf16>, vector<2x32xf32> -> vector<2x32xf32>
    %97 = arith.truncf %68 : vector<2x32xf32> to vector<2x32xbf16>
    %c0_57 = arith.constant 0 : index
    %c0_58 = arith.constant 0 : index
    %98 = vector.load %arg24[%c0_57, %c0_58] : memref<32x32xbf16, #tpu.memory_space<vmem>>, vector<32x32xbf16>
    %cst_59 = arith.constant dense<0.000000e+00> : vector<2x32xf32>
    %99 = tpu.matmul %97, %98, %cst_59 {dimension_numbers = #tpu.dot_dimension_numbers<[1], [0], [0], [1], [0, 0, 1, 1], [], []>} : vector<2x32xbf16>, vector<32x32xbf16>, vector<2x32xf32> -> vector<2x32xf32>
    %100 = arith.truncf %78 : vector<2x32xf32> to vector<2x32xbf16>
    %c0_60 = arith.constant 0 : index
    %c0_61 = arith.constant 0 : index
    %101 = vector.load %arg25[%c0_60, %c0_61] : memref<32x32xbf16, #tpu.memory_space<vmem>>, vector<32x32xbf16>
    %cst_62 = arith.constant dense<0.000000e+00> : vector<2x32xf32>
    %102 = tpu.matmul %100, %101, %cst_62 {dimension_numbers = #tpu.dot_dimension_numbers<[1], [0], [0], [1], [0, 0, 1, 1], [], []>} : vector<2x32xbf16>, vector<32x32xbf16>, vector<2x32xf32> -> vector<2x32xf32>
    %cst_63 = arith.constant 0.000000e+00 : f32
    %103 = vector.broadcast %cst_63 : f32 to vector<2x32xf32>
    %104 = arith.subf %103, %102 : vector<2x32xf32>
    %105 = math.exp %104 : vector<2x32xf32>
    %cst_64 = arith.constant 1.000000e+00 : f32
    %106 = vector.broadcast %cst_64 : f32 to vector<2x32xf32>
    %107 = arith.addf %106, %105 : vector<2x32xf32>
    %108 = tpu.reciprocal %107 {approx = true} : vector<2x32xf32> -> vector<2x32xf32>
    %109 = arith.mulf %102, %108 : vector<2x32xf32>
    %c0_65 = arith.constant 0 : index
    %c0_66 = arith.constant 0 : index
    %110 = vector.load %arg20[%c0_65, %c0_66] : memref<8x32xf32, #tpu.memory_space<vmem>>, vector<8x32xf32>
    %c0_67 = arith.constant 0 : index
    %c0_68 = arith.constant 0 : index
    %111 = vector.load %arg21[%c0_67, %c0_68] : memref<32x32xbf16, #tpu.memory_space<vmem>>, vector<32x32xbf16>
    %112 = tpu.concatenate %96, %90, %93 in 0 : vector<2x32xf32>, vector<2x32xf32>, vector<2x32xf32> -> vector<6x32xf32>
    %113 = vector.shape_cast %112 : vector<6x32xf32> to vector<6x1x32xf32>
    %114 = vector.shape_cast %110 : vector<8x32xf32> to vector<1x8x32xf32>
    %115 = vector.broadcast %113 : vector<6x1x32xf32> to vector<6x8x32xf32>
    %116 = vector.broadcast %114 : vector<1x8x32xf32> to vector<6x8x32xf32>
    %117 = arith.mulf %115, %116 : vector<6x8x32xf32>
    %118 = vector.shape_cast %117 : vector<6x8x32xf32> to vector<48x32xf32>
    %119 = arith.truncf %118 : vector<48x32xf32> to vector<48x32xbf16>
    %cst_69 = arith.constant dense<0.000000e+00> : vector<48x32xf32>
    %120 = tpu.matmul %119, %111, %cst_69 {dimension_numbers = #tpu.dot_dimension_numbers<[1], [0], [0], [1], [0, 0, 1, 1], [], []>} : vector<48x32xbf16>, vector<32x32xbf16>, vector<48x32xf32> -> vector<48x32xf32>
    %121 = vector.shape_cast %120 : vector<48x32xf32> to vector<6x8x32xf32>
    %122 = vector.extract_strided_slice %121 {offsets = [0, 0, 0], sizes = [2, 8, 32], strides = [1, 1, 1]} : vector<6x8x32xf32> to vector<2x8x32xf32>
    %123 = vector.extract_strided_slice %121 {offsets = [2, 0, 0], sizes = [2, 8, 32], strides = [1, 1, 1]} : vector<6x8x32xf32> to vector<2x8x32xf32>
    %124 = vector.extract_strided_slice %121 {offsets = [4, 0, 0], sizes = [2, 8, 32], strides = [1, 1, 1]} : vector<6x8x32xf32> to vector<2x8x32xf32>
    %c0_70 = arith.constant 0 : index
    %c0_71 = arith.constant 0 : index
    %c0_72 = arith.constant 0 : index
    %125 = vector.load %arg3[%c0_70, %c0_71, %c0_72] : memref<2x8x32xf32, #tpu.memory_space<vmem>>, vector<2x8x32xf32>
    %c0_73 = arith.constant 0 : index
    %c0_74 = arith.constant 0 : index
    %126 = vector.load %arg19[%c0_73, %c0_74] : memref<8x32xf32, #tpu.memory_space<vmem>>, vector<8x32xf32>
    %127 = vector.shape_cast %99 : vector<2x32xf32> to vector<2x1x32xf32>
    %128 = vector.broadcast %127 : vector<2x1x32xf32> to vector<2x8x32xf32>
    %129 = arith.mulf %122, %128 : vector<2x8x32xf32>
    %130 = arith.mulf %123, %125 : vector<2x8x32xf32>
    %131 = arith.addf %129, %130 : vector<2x8x32xf32>
    %132 = vector.shape_cast %126 : vector<8x32xf32> to vector<1x8x32xf32>
    %133 = vector.broadcast %132 : vector<1x8x32xf32> to vector<2x8x32xf32>
    %134 = arith.mulf %133, %129 : vector<2x8x32xf32>
    %135 = arith.addf %134, %125 : vector<2x8x32xf32>
    %136 = arith.mulf %124, %135 : vector<2x8x32xf32>
    %cst_75 = arith.constant dense<0.000000e+00> : vector<2x32xf32>
    %137 = vector.multi_reduction <add>, %136, %cst_75 [1] : vector<2x8x32xf32> to vector<2x32xf32>
    %c0_76 = arith.constant 0 : index
    %c0_77 = arith.constant 0 : index
    %c0_78 = arith.constant 0 : index
    %138 = vector.load %arg37[%c0_76, %c0_77, %c0_78] : memref<2x8x32xf32, #tpu.memory_space<vmem>>, vector<2x8x32xf32>
    tpu.vector_store %arg37[%c0_76, %c0_77, %c0_78], %131 {strides = array<i32>} : memref<2x8x32xf32, #tpu.memory_space<vmem>>, vector<2x8x32xf32>,
    %139 = arith.truncf %137 : vector<2x32xf32> to vector<2x32xbf16>
    %cst_79 = arith.constant dense<0.000000e+00> : vector<2x32xf32>
    %140 = tpu.matmul %139, %111, %cst_79 {dimension_numbers = #tpu.dot_dimension_numbers<[1], [0], [0], [1], [0, 0, 1, 1], [], []>} : vector<2x32xbf16>, vector<32x32xbf16>, vector<2x32xf32> -> vector<2x32xf32>
    %cst_80 = arith.constant 1.250000e-01 : f32
    %141 = vector.broadcast %cst_80 : f32 to vector<2x32xf32>
    %142 = arith.mulf %140, %141 : vector<2x32xf32>
    %143 = arith.subf %137, %142 : vector<2x32xf32>
    %144 = arith.mulf %143, %143 : vector<2x32xf32>
    %145 = arith.truncf %144 : vector<2x32xf32> to vector<2x32xbf16>
    %cst_81 = arith.constant dense<0.000000e+00> : vector<2x32xf32>
    %146 = tpu.matmul %145, %111, %cst_81 {dimension_numbers = #tpu.dot_dimension_numbers<[1], [0], [0], [1], [0, 0, 1, 1], [], []>} : vector<2x32xbf16>, vector<32x32xbf16>, vector<2x32xf32> -> vector<2x32xf32>
    %cst_82 = arith.constant 1.250000e-01 : f32
    %147 = vector.broadcast %cst_82 : f32 to vector<2x32xf32>
    %148 = arith.mulf %146, %147 : vector<2x32xf32>
    %cst_83 = arith.constant 9.99999974E-6 : f32
    %149 = vector.broadcast %cst_83 : f32 to vector<2x32xf32>
    %150 = arith.addf %148, %149 : vector<2x32xf32>
    %151 = math.rsqrt %150 : vector<2x32xf32>
    %152 = arith.mulf %143, %151 : vector<2x32xf32>
    %c0_84 = arith.constant 0 : index
    %c0_85 = arith.constant 0 : index
    %153 = vector.load %arg27[%c0_84, %c0_85] : memref<1x32xf32, #tpu.memory_space<vmem>>, vector<1x32xf32>
    %154 = vector.broadcast %153 : vector<1x32xf32> to vector<2x32xf32>
    %155 = arith.mulf %152, %154 : vector<2x32xf32>
    %c0_86 = arith.constant 0 : index
    %c0_87 = arith.constant 0 : index
    %156 = vector.load %arg28[%c0_86, %c0_87] : memref<1x32xf32, #tpu.memory_space<vmem>>, vector<1x32xf32>
    %157 = vector.broadcast %156 : vector<1x32xf32> to vector<2x32xf32>
    %158 = arith.addf %155, %157 : vector<2x32xf32>
    %159 = arith.mulf %158, %109 : vector<2x32xf32>
    %160 = arith.truncf %159 : vector<2x32xf32> to vector<2x32xbf16>
    %c0_88 = arith.constant 0 : index
    %c0_89 = arith.constant 0 : index
    %161 = vector.load %arg26[%c0_88, %c0_89] : memref<32x32xbf16, #tpu.memory_space<vmem>>, vector<32x32xbf16>
    %cst_90 = arith.constant dense<0.000000e+00> : vector<2x32xf32>
    %162 = tpu.matmul %160, %161, %cst_90 {dimension_numbers = #tpu.dot_dimension_numbers<[1], [0], [0], [1], [0, 0, 1, 1], [], []>} : vector<2x32xbf16>, vector<32x32xbf16>, vector<2x32xf32> -> vector<2x32xf32>
    %163 = arith.addf %0, %162 : vector<2x32xf32>
    %c0_91 = arith.constant 0 : index
    %c0_92 = arith.constant 0 : index
    %164 = vector.load %arg6[%c0_91, %c0_92] : memref<1x32xf32, #tpu.memory_space<vmem>>, vector<1x32xf32>
    %c0_93 = arith.constant 0 : index
    %c0_94 = arith.constant 0 : index
    %165 = vector.load %arg7[%c0_93, %c0_94] : memref<1x32xf32, #tpu.memory_space<vmem>>, vector<1x32xf32>
    %cst_95 = arith.constant dense<0.000000e+00> : vector<2xf32>
    %166 = vector.multi_reduction <add>, %163, %cst_95 [1] : vector<2x32xf32> to vector<2xf32>
    %167 = vector.shape_cast %166 : vector<2xf32> to vector<2x1xf32>
    %cst_96 = arith.constant 3.200000e+01 : f32
    %168 = vector.broadcast %cst_96 : f32 to vector<2x1xf32>
    %169 = arith.divf %167, %168 : vector<2x1xf32>
    %170 = vector.broadcast %169 : vector<2x1xf32> to vector<2x32xf32>
    %171 = arith.subf %163, %170 : vector<2x32xf32>
    %172 = arith.mulf %171, %171 : vector<2x32xf32>
    %cst_97 = arith.constant dense<0.000000e+00> : vector<2xf32>
    %173 = vector.multi_reduction <add>, %172, %cst_97 [1] : vector<2x32xf32> to vector<2xf32>
    %174 = vector.shape_cast %173 : vector<2xf32> to vector<2x1xf32>
    %cst_98 = arith.constant 3.200000e+01 : f32
    %175 = vector.broadcast %cst_98 : f32 to vector<2x1xf32>
    %176 = arith.divf %174, %175 : vector<2x1xf32>
    %177 = vector.broadcast %169 : vector<2x1xf32> to vector<2x32xf32>
    %178 = arith.subf %163, %177 : vector<2x32xf32>
    %cst_99 = arith.constant 9.99999974E-6 : f32
    %179 = vector.broadcast %cst_99 : f32 to vector<2x1xf32>
    %180 = arith.addf %176, %179 : vector<2x1xf32>
    %181 = math.rsqrt %180 : vector<2x1xf32>
    %182 = vector.broadcast %181 : vector<2x1xf32> to vector<2x32xf32>
    %183 = arith.mulf %178, %182 : vector<2x32xf32>
    %184 = vector.broadcast %164 : vector<1x32xf32> to vector<2x32xf32>
    %185 = arith.mulf %183, %184 : vector<2x32xf32>
    %186 = vector.broadcast %165 : vector<1x32xf32> to vector<2x32xf32>
    %187 = arith.addf %185, %186 : vector<2x32xf32>
    %c0_100 = arith.constant 0 : index
    %c0_101 = arith.constant 0 : index
    %188 = vector.load %arg1[%c0_100, %c0_101] : memref<2x32xf32, #tpu.memory_space<vmem>>, vector<2x32xf32>
    %189 = arith.subf %188, %187 : vector<2x32xf32>
    %c0_102 = arith.constant 0 : index
    %c0_103 = arith.constant 0 : index
    %190 = vector.load %arg29[%c0_102, %c0_103] : memref<1x32xf32, #tpu.memory_space<vmem>>, vector<1x32xf32>
    %191 = vector.broadcast %190 : vector<1x32xf32> to vector<2x32xf32>
    %192 = arith.mulf %189, %191 : vector<2x32xf32>
    %193 = arith.addf %187, %192 : vector<2x32xf32>
    %c0_104 = arith.constant 0 : index
    %c0_105 = arith.constant 0 : index
    %194 = vector.load %arg30[%c0_104, %c0_105] : memref<1x32xf32, #tpu.memory_space<vmem>>, vector<1x32xf32>
    %195 = vector.broadcast %194 : vector<1x32xf32> to vector<2x32xf32>
    %196 = arith.mulf %189, %195 : vector<2x32xf32>
    %197 = arith.addf %187, %196 : vector<2x32xf32>
    %198 = arith.truncf %197 : vector<2x32xf32> to vector<2x32xbf16>
    %c0_106 = arith.constant 0 : index
    %c0_107 = arith.constant 0 : index
    %199 = vector.load %arg32[%c0_106, %c0_107] : memref<32x32xbf16, #tpu.memory_space<vmem>>, vector<32x32xbf16>
    %cst_108 = arith.constant dense<0.000000e+00> : vector<2x32xf32>
    %200 = tpu.matmul %198, %199, %cst_108 {dimension_numbers = #tpu.dot_dimension_numbers<[1], [0], [0], [1], [0, 0, 1, 1], [], []>} : vector<2x32xbf16>, vector<32x32xbf16>, vector<2x32xf32> -> vector<2x32xf32>
    %cst_109 = arith.constant 0.000000e+00 : f32
    %201 = vector.broadcast %cst_109 : f32 to vector<2x32xf32>
    %202 = arith.subf %201, %200 : vector<2x32xf32>
    %203 = math.exp %202 : vector<2x32xf32>
    %cst_110 = arith.constant 1.000000e+00 : f32
    %204 = vector.broadcast %cst_110 : f32 to vector<2x32xf32>
    %205 = arith.addf %204, %203 : vector<2x32xf32>
    %206 = tpu.reciprocal %205 {approx = true} : vector<2x32xf32> -> vector<2x32xf32>
    %207 = arith.truncf %193 : vector<2x32xf32> to vector<2x32xbf16>
    %c0_111 = arith.constant 0 : index
    %c0_112 = arith.constant 0 : index
    %208 = vector.load %arg31[%c0_111, %c0_112] : memref<32x32xbf16, #tpu.memory_space<vmem>>, vector<32x32xbf16>
    %cst_113 = arith.constant dense<0.000000e+00> : vector<2x32xf32>
    %209 = tpu.matmul %207, %208, %cst_113 {dimension_numbers = #tpu.dot_dimension_numbers<[1], [0], [0], [1], [0, 0, 1, 1], [], []>} : vector<2x32xbf16>, vector<32x32xbf16>, vector<2x32xf32> -> vector<2x32xf32>
    %cst_114 = arith.constant 0.000000e+00 : f32
    %210 = vector.broadcast %cst_114 : f32 to vector<2x32xf32>
    %211 = arith.maximumf %209, %210 : vector<2x32xf32>
    %212 = arith.mulf %211, %211 : vector<2x32xf32>
    %213 = arith.truncf %212 : vector<2x32xf32> to vector<2x32xbf16>
    %c0_115 = arith.constant 0 : index
    %c0_116 = arith.constant 0 : index
    %214 = vector.load %arg33[%c0_115, %c0_116] : memref<32x32xbf16, #tpu.memory_space<vmem>>, vector<32x32xbf16>
    %cst_117 = arith.constant dense<0.000000e+00> : vector<2x32xf32>
    %215 = tpu.matmul %213, %214, %cst_117 {dimension_numbers = #tpu.dot_dimension_numbers<[1], [0], [0], [1], [0, 0, 1, 1], [], []>} : vector<2x32xbf16>, vector<32x32xbf16>, vector<2x32xf32> -> vector<2x32xf32>
    %216 = arith.mulf %206, %215 : vector<2x32xf32>
    %217 = arith.addf %163, %216 : vector<2x32xf32>
    %c0_118 = arith.constant 0 : index
    %c0_119 = arith.constant 0 : index
    %218 = vector.load %arg34[%c0_118, %c0_119] : memref<2x32xf32, #tpu.memory_space<vmem>>, vector<2x32xf32>
    tpu.vector_store %arg34[%c0_118, %c0_119], %217 {strides = array<i32>} : memref<2x32xf32, #tpu.memory_space<vmem>>, vector<2x32xf32>,
    %c0_120 = arith.constant 0 : index
    %c0_121 = arith.constant 0 : index
    %219 = vector.load %arg35[%c0_120, %c0_121] : memref<2x32xf32, #tpu.memory_space<vmem>>, vector<2x32xf32>
    tpu.vector_store %arg35[%c0_120, %c0_121], %187 {strides = array<i32>} : memref<2x32xf32, #tpu.memory_space<vmem>>, vector<2x32xf32>,
    %c0_122 = arith.constant 0 : index
    %c0_123 = arith.constant 0 : index
    %220 = vector.load %arg36[%c0_122, %c0_123] : memref<2x32xf32, #tpu.memory_space<vmem>>, vector<2x32xf32>
    tpu.vector_store %arg36[%c0_122, %c0_123], %24 {strides = array<i32>} : memref<2x32xf32, #tpu.memory_space<vmem>>, vector<2x32xf32>,
    return
  }
}

</mosaic_0001>

<bundles_post_ra>
// kernel: fwd.1
= control target key start
LH: loop header
LB: loop body
LE: loop exit
PB: predicated region body
PF: predicated region fallthrough
CT: control target
= control target key end

     0   :  { %s1311_s6 = smov 1   ;;  %s1312_s10 = smov 2   ;;  %s1695_s0 = inlined_call_operand.smem [shape: u32[38], index: -1, kind: input, shape index: {}] }
   0x1   :  { %s1362_s5 = sld [smem:[%s1695_s0]]   ;;  %s1313_s14 = smov 3  }
   0x2   :  { %s1367_s9 = sld [smem:[%s1695_s0 + %s1311_s6]]   ;;  %s1314_s18 = smov 4  }
   0x3   :  { %s1372_s13 = sld [smem:[%s1695_s0 + %s1312_s10]]   ;;  %s1315_s22 = smov 5  }
   0x4   :  { %s1377_s17 = sld [smem:[%s1695_s0 + %s1313_s14]]   ;;  %s1316_s26 = smov 6  }
   0x5   :  { %s1382_s21 = sld [smem:[%s1695_s0 + %s1314_s18]]   ;;  %s1317_s30 = smov 7  }
   0x6   :  { %s1387_s25 = sld [smem:[%s1695_s0 + %s1315_s22]]   ;;  %s1318_s4 = smov 8  }
   0x7   :  { %s1392_s29 = sld [smem:[%s1695_s0 + %s1316_s26]]   ;;  %s1319_s10 = smov 9  }
   0x8   :  { %1703 = sst [smem:[#allocation5_spill]] %s1367_s9  ;;  %s1320_s15 = smov 10  }
   0x9   :  { %s1397_s3 = sld [smem:[%s1695_s0 + %s1317_s30]]   ;;  %s1321_s20 = smov 11  }
   0xa   :  { %1704 = sst [smem:[#allocation6_spill]] %s1377_s17  ;;  %s1322_s26 = smov 12  }
   0xb   :  { %s1402_s8 = sld [smem:[%s1695_s0 + %s1318_s4]]   ;;  %s1323_s1 = smov 13  }
   0xc   :  { %s1407_s14 = sld [smem:[%s1695_s0 + %s1319_s10]]   ;;  %s1324_s7 = smov 14  }
   0xd   :  { %1705 = sst [smem:[#allocation7_spill]] %s1392_s29  ;;  %s1326_s22 = smov 16  }
   0xe   :  { %s1412_s19 = sld [smem:[%s1695_s0 + %s1320_s15]]   ;;  %s1325_s15 = smov 15  }
   0xf   :  { %1706 = sst [smem:[#allocation8_spill]] %s1397_s3  ;;  %s1327_s28 = smov 17  }
  0x10   :  { %s1417_s24 = sld [smem:[%s1695_s0 + %s1321_s20]]  }
  0x11   :  { %s1422_s30 = sld [smem:[%s1695_s0 + %s1322_s26]]  }
  0x12   :  { %s1427_s6 = sld [smem:[%s1695_s0 + %s1323_s1]]  }
  0x13   :  { %s1432_s12 = sld [smem:[%s1695_s0 + %s1324_s7]]   ;;  %s1328_s7 = smov 18  }
  0x14   :  { %1707 = sst [smem:[#allocation9_spill]] %s1412_s19 }
  0x15   :  { %s1437_s20 = sld [smem:[%s1695_s0 + %s1325_s15]]   ;;  %s1329_s15 = smov 19  }
  0x16   :  { %1708 = sst [smem:[#allocation10_spill]] %s1417_s24 }
  0x17   :  { %s1442_s27 = sld [smem:[%s1695_s0 + %s1326_s22]]   ;;  %s1330_s22 = smov 20  }
  0x18   :  { %1709 = sst [smem:[#allocation11_spill]] %s1427_s6 }
  0x19   :  { %s1447_s4 = sld [smem:[%s1695_s0 + %s1327_s28]]   ;;  %s1331_s28 = smov 21  }
  0x1a   :  { %s1452_s9 = sld [smem:[%s1695_s0 + %s1328_s7]]   ;;  %s1332_s7 = smov 22  }
  0x1b   :  { %s1457_s3 = sld [smem:[%s1695_s0 + %s1329_s15]]   ;;  %s1333_s15 = smov 23  }
  0x1c   :  { %s1462_s29 = sld [smem:[%s1695_s0 + %s1330_s22]]   ;;  %s1334_s22 = smov 24  }
  0x1d   :  { %1710 = sst [smem:[#allocation12_spill]] %s1442_s27 }
  0x1e   :  { %s1467_s17 = sld [smem:[%s1695_s0 + %s1331_s28]]   ;;  %s1335_s28 = smov 25  }
  0x1f   :  { %s1472_s27 = sld [smem:[%s1695_s0 + %s1332_s7]]   ;;  %s1336_s7 = smov 26  }
  0x20   :  { %s1492_s6 = sld [smem:[%s1695_s0 + %s1336_s7]]   ;;  %s1340_s7 = smov 30  }
  0x21   :  { %1711 = sst [smem:[#allocation13_spill]] %s1457_s3 }
  0x22   :  { %1712 = sst [smem:[#allocation14_spill]] %s1462_s29 }
  0x23   :  { %s1477_s3 = sld [smem:[%s1695_s0 + %s1333_s15]]   ;;  %s1337_s15 = smov 27  }
  0x24   :  { %1713 = sst [smem:[#allocation15_spill]] %s1467_s17 }
  0x25   :  { %s1482_s29 = sld [smem:[%s1695_s0 + %s1334_s22]]   ;;  %s1338_s22 = smov 28  }
  0x26   :  { %s1487_s17 = sld [smem:[%s1695_s0 + %s1335_s28]]   ;;  %s1339_s28 = smov 29  }
  0x27   :  { %1715 = sst [smem:[#allocation17_spill]] %s1492_s6 }
  0x28   :  { %s1497_s19 = sld [smem:[%s1695_s0 + %s1337_s15]]   ;;  %s1341_s15 = smov 31  }
  0x29   :  { %s1502_s24 = sld [smem:[%s1695_s0 + %s1338_s22]]   ;;  %s1342_s22 = smov 32  }
  0x2a   :  { %s1512_s6 = sld [smem:[%s1695_s0 + %s1340_s7]]   ;;  %s1344_s7 = smov 34  }
  0x2c   :  { %1714 = sst [smem:[#allocation16_spill]] %s1487_s17 }
  0x2d   :  { %s1507_s17 = sld [smem:[%s1695_s0 + %s1339_s28]]   ;;  %s1343_s28 = smov 33  }
  0x2e   :  { %1716 = sst [smem:[#allocation18_spill]] %s1497_s19 }
  0x2f   :  { %1717 = sst [smem:[#allocation19_spill]] %s1502_s24 }
  0x30   :  { %1719 = sst [smem:[#allocation21_spill]] %s1512_s6 }
  0x31   :  { %s1517_s19 = sld [smem:[%s1695_s0 + %s1341_s15]]   ;;  %s1345_s15 = smov 35  }
  0x32   :  { %s1522_s24 = sld [smem:[%s1695_s0 + %s1342_s22]]   ;;  %s1346_s22 = smov 36  }
  0x33   :  { %1718 = sst [smem:[#allocation20_spill]] %s1507_s17 }
  0x34   :  { %s1527_s17 = sld [smem:[%s1695_s0 + %s1343_s28]]   ;;  %s1347_s28 = smov 37  }
  0x35   :  { %s1532_s6 = sld [smem:[%s1695_s0 + %s1344_s7]]  }
  0x37   :  { %1720 = sst [smem:[#allocation22_spill]] %s1517_s19 }
  0x38   :  { %1721 = sst [smem:[#allocation23_spill]] %s1522_s24 }
  0x39   :  { %s1537_s19 = sld [smem:[%s1695_s0 + %s1345_s15]]  }
  0x3a   :  { %1722 = sst [smem:[#allocation24_spill]] %s1527_s17 }
  0x3b   :  { %s1542_s24 = sld [smem:[%s1695_s0 + %s1346_s22]]  }
  0x3c   :  { %s1547_s17 = sld [smem:[%s1695_s0 + %s1347_s28]]  }
  0x3d   :  { %v1550_v0 = vld [vmem:[%s1362_s5] sm:$0x3]  ;;  %vm154_vm0 = vcmask 254976  }
  0x3e   :  { %v155_v1 = vsel %vm154_vm0, %v1550_v0, 0.0 }
  0x3f   :  { %156 = vadd.xlane.f32.xlu0 %v155_v1 }
  0x40   :  { %81 = vsyncpa [#allocation3], 0  ;;  %v1348_v2 = vmov 32.0   ;;  %v203_v14 = vld [vmem:[%s1432_s12 + $0x18] sm:$0xff]  ;;  %v202_v15 = vld [vmem:[%s1432_s12 + $0x10] sm:$0xff]  ;;  %vm204_vm5 = vcmask 261120  }
  0x41   :  { %1261 = vrcp.f32 %v1348_v2  ;;  %220 = vmatpush.msra.mxu0 %v203_v14  ;;  %v201_v16 = vld [vmem:[%s1432_s12 + $0x8] sm:$0xff]  ;;  %v200_v17 = vld [vmem:[%s1432_s12] sm:$0xff]  ;;  %v1093_v40 = vld [vmem:[%s1437_s20 + $0x38] sm:$0xff]  ;;  %vm231_vm6 = vcmask 130048   ;;  %s1349_s0 = smov 80   ;;  %s1350_s5 = smov 96  }
  0x42   :  { %v1246_v27 = vld [vmem:[%s1382_s21] ss:$0 sm:$0xff]  ;;  %v230_v38 = vld [vmem:[%s1437_s20 + $0x8] sm:$0xff]  ;;  %v1092_v41 = vld [vmem:[%s1437_s20 + $0x30] sm:$0xff]  ;;  %330 = vmatpush.msra.mxu1 %v1093_v40  ;;  %s1352_s21 = smov 112   ;;  %vm612_vm7 = vcmask 1041408  }
  0x43   :  { %221 = vmatpush.msra.mxu0 %v202_v15  ;;  %v1247_v29 = vld [vmem:[%s1387_s25] ss:$0 sm:$0xff]  ;;  %249 = vmatpush.msra.mxu2 %v230_v38  ;;  %v1090_v44 = vld [vmem:[%s1437_s20 + $0x28] sm:$0xff]  ;;  %v1087_v46 = vld [vmem:[%s1437_s20 + $0x18] sm:$0xff]  ;;  %s1723_s25 = sld [smem:[#allocation10_spill]]  ;;  %vm614_vm8 = vcmask 1043456  }
  0x44   :  { %v192_v32 = vld [vmem:[%s1372_s13] sm:$0x3]  ;;  %331 = vmatpush.msra.mxu1 %v1092_v41  ;;  %s1351_s13 = smov 64   ;;  %303 = vmatpush.msra.mxu3 %v1090_v44  ;;  %v1086_v47 = vld [vmem:[%s1437_s20 + $0x10] sm:$0xff]  ;;  %v1096_v49 = vld [vmem:[%s1437_s20 + $0x48] sm:$0xff]  ;;  %s1731_s12 = sld [smem:[#allocation13_spill]] }
  0x45   :  { %222 = vmatpush.msra.mxu0 %v201_v16  ;;  %v1248_v34 = vld [vmem:[%s1402_s8] ss:$0 sm:$0xff]  ;;  %v402_v51 = vld [vmem:[%s1447_s4 + $0x18] sm:$0xff]  ;;  %v401_v52 = vld [vmem:[%s1447_s4 + $0x10] sm:$0xff]  ;;  %s1724_s8 = sld [smem:[#allocation16_spill]]  ;;  %vm731_vm9 = vcmask 1041409  }
  0x46   :  { %v229_v39 = vld [vmem:[%s1437_s20] sm:$0xff]  ;;  %v400_v53 = vld [vmem:[%s1447_s4 + $0x8] sm:$0xff]  ;;  %v429_v14 = vld [vmem:[%s1452_s9 + $0x10] sm:$0xff]  ;;  %s1736_s7 = sld [smem:[#allocation23_spill]]  ;;  %s1026_s26 = sshll.u32 %s1532_s6, 4  ;;  %s1027_s26 = int_to_ptr.hbm [resolvable:$true] %s1026_s26 }
  0x47   :  { %v1262_v3 = vpop.eup %1261  ;;  %223 = vmatpush.msra.mxu0 %v200_v17  ;;  %250 = vmatpush.msra.mxu2 %v229_v39  ;;  %v1089_v45 = vld [vmem:[%s1437_s20 + $0x20] sm:$0xff]  ;;  %v1186_v63 = vld [vmem:[%s1472_s27 + $0x8] sm:$0xff]  ;;  %s1737_s10 = sld [smem:[#allocation24_spill]]  ;;  %s1297_s28 = sshra.s32 %s1027_s26, 4  ;;  %s1298_s28 = int_to_ptr.hbm [resolvable:$true] %s1297_s28 }
  0x48   :  { %v159_v4 = vmul.f32 32.0, %v1262_v3  ;;  %vm163_vm1 = vweird.f32 %v1262_v3  ;;  %304 = vmatpush.msra.mxu3 %v1089_v45  ;;  %v1095_v50 = vld [vmem:[%s1437_s20 + $0x40] sm:$0xff]  ;;  %489 = vmatpush.bf16.msrb.mxu1 %v1186_v63  ;;  %v428_v15 = vld [vmem:[%s1452_s9 + $0x8] sm:$0xff]  ;;  %s1733_s20 = sld [smem:[#allocation18_spill]]  ;;  %s1299_s1 = scalar_lea.hbm %s1298_s28, 2 }
  0x49   :  { %276 = vmatpush.msrb.mxu2 %v1087_v46  ;;  %v399_v54 = vld [vmem:[%s1447_s4] sm:$0xff]  ;;  %s1735_s4 = sld [smem:[#allocation22_spill]]  ;;  %p1300_p0 = scmp.ne.s32.totalorder %s1298_s28, %s1299_s1 }
  0x4a   :  { %v160_v5 = vsub.f32 1.0, %v159_v4  ;;  %418 = vmatpush.msrb.mxu3 %v402_v51  ;;  %v1249_v57 = vld [vmem:[%s1407_s14] ss:$0 sm:$0xff]  ;;  %s1725_s14 = sld [smem:[#allocation9_spill]]  ;;  %s1301_s2 = scalar_lea.hbm %s1532_s6, 2 }
  0x4b   :  { %277 = vmatpush.msrb.mxu2 %v1086_v47  ;;  %v1185_v1 = vld [vmem:[%s1472_s27] sm:$0xff]  ;;  %s1734_s27 = sld [smem:[#allocation19_spill]]  ;;  %p1302_p1 = scmp.lt.s32.totalorder %s1298_s28, %s1532_s6 }
  0x4c   :  { %v161_v6 = vmul.f32 %v1262_v3, %v160_v5  ;;  %419 = vmatpush.msrb.mxu3 %v401_v52  ;;  %490 = vmatpush.bf16.msrb.mxu1 %v1185_v1  ;;  %v1250_v2 = vld [vmem:[%s1422_s30] ss:$0 sm:$0xff]  ;;  %s1730_s30 = sld [smem:[#allocation6_spill]]  ;;  %p1303_p2 = scmp.lt.s32.totalorder %s1301_s2, %s1299_s1 }
  0x4d   :  { %v427_v16 = vld [vmem:[%s1452_s9] sm:$0xff]  ;;  %s1738_s11 = sld [smem:[#allocation7_spill]] }
  0x4e   :  { %v162_v7 = vadd.f32 %v1262_v3, %v161_v6  ;;  %420 = vmatpush.msrb.mxu3 %v400_v53  ;;  %v1251_v17 = vld [vmem:[%s1723_s25] ss:$0 sm:$0xff]  ;;  %s1739_s15 = sld [smem:[#allocation8_spill]]  ;;  %p1304_p3 = por %p1303_p2, %p1302_p1 }
  0x4f   :  { %s1740_s16 = sld [smem:[#allocation5_spill]] }
  0x50   :  { %v1554_v8 = vsel %vm163_vm1, %v1262_v3, %v162_v7  ;;  %421 = vmatpush.msrb.mxu3 %v399_v54  ;;  %v1190_v3 = vld [vmem:[%s1482_s29 + $0x8] sm:$0xff]  ;;  %v1189_v7 = vld [vmem:[%s1482_s29] sm:$0xff]  ;;  %s1726_s29 = sld [smem:[#allocation11_spill]]  ;;  %p1305_p4 = pnand %p1304_p3, %p1300_p0 }
  0x51   :  { %s1741_s18 = sld [smem:[#allocation21_spill]] }
  0x52   :  { %s1742_s22 = sld [smem:[#allocation20_spill]] }
  0xb2   :  { %v157_v9 = vpop.xlane.xlu0 %156 }
  0xb3   :  { %v165_v10 = vmul.f32 %v1554_v8, %v157_v9 }
  0xb5   :  { %v166_v11 = vsub.f32 %v1550_v0, %v165_v10 }
  0xb7   :  { %v167_v12 = vmul.f32 %v166_v11, %v166_v11 }
  0xb9   :  { %v168_v13 = vsel %vm154_vm0, %v167_v12, 0.0  ;;  %v1187_v12 = vld [vmem:[%s1477_s3] sm:$0xff] }
  0xba   :  { %169 = vadd.xlane.f32.xlu0 %v168_v13  ;;  %v430_v13 = vld [vmem:[%s1452_s9 + $0x18] sm:$0xff]  ;;  %s1727_s9 = sld [smem:[#allocation15_spill]] }
  0xbb   :  { %446 = vmatpush.msrb.mxu0 %v430_v13 }
  0xbd   :  { %447 = vmatpush.msrb.mxu0 %v429_v14 }
  0xbf   :  { %448 = vmatpush.msrb.mxu0 %v428_v15 }
  0xc0   :  { %v1194_v46 = vld [vmem:[%s1727_s9 + $0x8] sm:$0xff] }
  0xc1   :  { %449 = vmatpush.msrb.mxu0 %v427_v16 }
 0x12d   :  { %v170_v18 = vpop.xlane.xlu0 %169 }
 0x12e   :  { %v171_v19 = vmul.f32 %v170_v18, %v1554_v8  ;;  %v1192_v18 = vld [vmem:[%s1724_s8 + $0x8] sm:$0xff] }
 0x130   :  { %v172_v20 = vadd.f32 1e-05, %v171_v19 }
 0x132   :  { %1263 = vrsqrt.f32 %v172_v20  ;;  %vm179_vm3 = vweird.f32 %v172_v20 }
 0x138   :  { %v1264_v21 = vpop.eup %1263 }
 0x139   :  { %v174_v22 = vmul.f32 %v1264_v21, %v172_v20  ;;  %vm180_vm2 = vweird.f32 %v1264_v21 }
 0x13a   :  { %vm181_vm4 = vmor %vm179_vm3, %vm180_vm2 }
 0x13b   :  { %v175_v23 = vmul.f32 %v1264_v21, %v174_v22 }
 0x13d   :  { %v176_v24 = vmul.f32 0.5, %v175_v23 }
 0x13f   :  { %v177_v25 = vsub.f32 1.5, %v176_v24  ;;  %v1252_v24 = vld [vmem:[%s1725_s14] ss:$0 sm:$0xff] }
 0x141   :  { %v178_v26 = vmul.f32 %v1264_v21, %v177_v25 }
 0x143   :  { %v182_v28 = vsel %vm181_vm4, %v1264_v21, %v178_v26  ;;  %v1191_v21 = vld [vmem:[%s1724_s8] sm:$0xff] }
 0x144   :  { %v183_v30 = vmul.f32 %v182_v28, %v166_v11  ;;  %v1188_v11 = vld [vmem:[%s1477_s3 + $0x8] sm:$0xff]  ;;  %s1728_s3 = sld [smem:[#allocation12_spill]] }
 0x146   :  { %v187_v31 = vmul.f32 %v1246_v27, %v183_v30 }
 0x148   :  { %v1567_v33 = vadd.f32 %v1247_v29, %v187_v31  ;;  %v1253_v31 = vld [vmem:[%s1726_s29] ss:$0 sm:$0xff] }
 0x14a   :  { %1018 = vst.msk [vmem:[%s1542_s24] sm:$0x3] %vm154_vm0, %v1567_v33  ;;  %v1574_v35 = vsub.f32 %v192_v32, %v1567_v33  ;;  %v1254_v47 = vld [vmem:[%s1728_s3] ss:$0 sm:$0xff]  ;;  %s1729_s24 = sld [smem:[#allocation14_spill]] }
 0x14c   :  { %v198_v36 = vmul.f32 %v1248_v34, %v1574_v35 }
 0x14e   :  { %v199_v37 = vadd.f32 %v198_v36, %v1567_v33 }
 0x150   :  { %1084 = vmatmul.msk.f32.vlgmr.msra.gmra.mxu0 %vm204_vm5, %v199_v37  ;;  %v601_v63 = vld [vmem:[%s1729_s24] sm:$0xff] }
 0x151   :  { %588 = vmatpush.bf16.msra.mxu0 %v1192_v18 }
 0x155   :  { %589 = vmatpush.bf16.msra.mxu0 %v1191_v21 }
 0x1cd   :  { %v225_v42 = vpop.f32.mrf.mxu0 }
 0x1ce   :  { %1265 = vtanh.f32 %v225_v42 }
 0x1d4   :  { %v1266_v43 = vpop.eup %1265 }
 0x1d5   :  { %312 = vrot.lane.b32.xlu2 %v1266_v43, %s1349_s0  ;;  %285 = vrot.lane.b32.xlu1 %v1266_v43, %s1350_s5 }
 0x1d6   :  { %1085 = vmatmul.msk.f32.vlgmr.msra.gmra.mxu2 %vm231_vm6, %v1266_v43 }
 0x1d7   :  { %357 = vmatpush.msra.mxu2 %v1096_v49 }
 0x1d9   :  { %358 = vmatpush.msra.mxu2 %v1095_v50 }
 0x1dd   :  { %339 = vrot.lane.b32.xlu2 %v1266_v43, %s1351_s13  ;;  %258 = vrot.lane.b32.xlu1 %v1266_v43, %s1352_s21 }
 0x22f   :  { %v313_v48 = vpop.permute.xlu2 %312 }
 0x230   :  { %1094 = vmatmul.msk.f32.vlgmr.msra.gmra.mxu1 %vm231_vm6, %v313_v48 }
 0x231   :  { %670 = vmatpush.bf16.msra.mxu1 %v1194_v46 }
 0x237   :  { %v340_v58 = vpop.permute.xlu2 %339 }
 0x247   :  { %v286_v55 = vpop.permute.xlu1 %285 }
 0x248   :  { %1091 = vmatmul.msk.f32.vlgmr.msra.gmra.mxu3 %vm231_vm6, %v286_v55 }
 0x249   :  { %555 = vmatpush.bf16.msra.mxu3 %v1190_v3 }
 0x24d   :  { %556 = vmatpush.bf16.msra.mxu3 %v1189_v7 }
 0x24f   :  { %v259_v56 = vpop.permute.xlu1 %258 }
 0x250   :  { %1088 = vmatmul.msk.f32.vlgmr.msrb.gmra.mxu2 %vm231_vm6, %v259_v56 }
 0x251   :  { %522 = vmatpush.bf16.msrb.mxu2 %v1188_v11 }
 0x255   :  { %523 = vmatpush.bf16.msrb.mxu2 %v1187_v12 }
 0x258   :  { %1097 = vmatmul.msk.f32.vlgmr.msra.gmra.mxu2 %vm231_vm6, %v340_v58 }
 0x259   :  { %v252_v59 = vpop.f32.mrf.mxu2  ;;  %743 = vmatpush.bf16.msra.mxu2 %v1194_v46 }
 0x25a   :  { %v367_v60 = vadd.f32 %v1249_v57, %v252_v59 }
 0x25c   :  { %v368_v61 = vmul.f32 %v367_v60, %v1574_v35 }
 0x25e   :  { %v369_v62 = vadd.f32 %v368_v61, %v1567_v33 }
 0x260   :  { %1098 = vmatmul.msk.f32.vlgmr.msrb.gmra.mxu3 %vm204_vm5, %v369_v62 }
 0x261   :  { %777 = vmatpush.bf16.msrb.mxu3 %v1194_v46 }
 0x2ad   :  { %v333_v4 = vpop.f32.mrf.mxu1 }
 0x2ae   :  { %v388_v5 = vadd.f32 %v1250_v2, %v333_v4 }
 0x2b0   :  { %v389_v6 = vmul.f32 %v388_v5, %v1574_v35 }
 0x2b2   :  { %v390_v9 = vadd.f32 %v389_v6, %v1567_v33 }
 0x2b4   :  { %v463_v10 = vpack.c.bf16 %v390_v9, %v390_v9 }
 0x2b6   :  { %1108 = vmatmul.msk.bf16.vlgmr.msrb.gmra.mxu1 %vm204_vm5, %v463_v10 }
 0x2cb   :  { %v306_v19 = vpop.f32.mrf.mxu3 }
 0x2cc   :  { %v381_v20 = vadd.f32 %v1251_v17, %v306_v19 }
 0x2ce   :  { %v382_v22 = vmul.f32 %v381_v20, %v1574_v35 }
 0x2d0   :  { %v383_v23 = vadd.f32 %v382_v22, %v1567_v33 }
 0x2d2   :  { %v529_v25 = vpack.c.bf16 %v383_v23, %v383_v23 }
 0x2d3   :  { %v279_v26 = vpop.f32.mrf.mxu2 }
 0x2d4   :  { %v374_v27 = vadd.f32 %v1252_v24, %v279_v26  ;;  %1126 = vmatmul.msk.bf16.vlgmr.msra.gmra.mxu3 %vm204_vm5, %v529_v25  ;;  %v688_v24 = vld [vmem:[%s1730_s30] sm:$0xff] }
 0x2d6   :  { %v375_v28 = vmul.f32 %v374_v27, %v1574_v35 }
 0x2d8   :  { %v376_v29 = vadd.f32 %v375_v28, %v1567_v33 }
 0x2da   :  { %v496_v30 = vpack.c.bf16 %v376_v29, %v376_v29 }
 0x2db   :  { %v360_v32 = vpop.f32.mrf.mxu2 }
 0x2dc   :  { %1117 = vmatmul.msk.bf16.vlgmr.msrb.gmra.mxu2 %vm204_vm5, %v496_v30  ;;  %v395_v36 = vadd.f32 %v1253_v31, %v360_v32  ;;  %v690_v30 = vld [vmem:[%s1731_s12] sm:$0xff]  ;;  %v689_v32 = vld [vmem:[%s1730_s30 + $0x8] sm:$0xff] }
 0x2de   :  { %v396_v37 = vmul.f32 %v395_v36, %v1574_v35  ;;  %v1193_v35 = vld [vmem:[%s1727_s9] sm:$0xff] }
 0x2df   :  { %671 = vmatpush.bf16.msra.mxu1 %v1193_v35  ;;  %744 = vmatpush.bf16.msra.mxu2 %v1193_v35 }
 0x2e0   :  { %v397_v39 = vadd.f32 %v396_v37, %v1567_v33  ;;  %778 = vmatpush.bf16.msrb.mxu3 %v1193_v35 }
 0x2e2   :  { %v562_v40 = vpack.c.bf16 %v397_v39, %v397_v39 }
 0x2e3   :  { %v423_v34 = vpop.f32.mrf.mxu3 }
 0x2e4   :  { %1267 = vtanh.f32 %v423_v34 }
 0x2ea   :  { %v1268_v38 = vpop.eup %1267 }
 0x2eb   :  { %1099 = vmatmul.msk.f32.vlgmr.msrb.gmra.mxu0 %vm204_vm5, %v1268_v38 }
 0x2f3   :  { %1135 = vmatmul.msk.bf16.vlgmr.msra.gmra.mxu0 %vm204_vm5, %v562_v40 }
 0x333   :  { %v492_v41 = vpop.f32.mrf.mxu1 }
 0x334   :  { %v610_v58 = vrot.slane %v492_v41, 4 }
 0x33b   :  { %v494_v42 = vpop.f32.mrf.mxu1 }
 0x357   :  { %v1631_v43 = vpop.f32.mrf.mxu3 }
 0x358   :  { %v693_v22 = vperm.slane %v1631_v43, 0  ;;  %v692_v27 = vrot.slane %v1631_v43, 1 }
 0x35a   :  { %v694_v29 = vperm.slane %v692_v27, 0 }
 0x35f   :  { %v525_v44 = vpop.f32.mrf.mxu2  ;;  %v560_v45 = vpop.f32.mrf.mxu3 }
 0x367   :  { %v527_v48 = vpop.f32.mrf.mxu2 }
 0x368   :  { %v451_v49 = vpop.f32.mrf.mxu0 }
 0x369   :  { %v457_v33 = vadd.f32 %v1254_v47, %v451_v49 }
 0x36b   :  { %v458_v50 = vmul.f32 1.442695, %v457_v33 }
 0x36d   :  { %1269 = vpow2.f32 %v458_v50 }
 0x370   :  { %v1636_v51 = vpop.f32.mrf.mxu0 }
 0x373   :  { %v1270_v52 = vpop.eup %1269 }
 0x374   :  { %v460_v53 = vsub.f32 0.0, %v1270_v52 }
 0x376   :  { %v461_v54 = vmul.f32 1.442695, %v460_v53 }
 0x378   :  { %1271 = vpow2.f32 %v461_v54  ;;  %v593_v55 = vpop.f32.mrf.mxu0 }
 0x37e   :  { %v1272_v56 = vpop.eup %1271 }
 0x37f   :  { %v607_v57 = vrot.slane %v1272_v56, 6 }
 0x381   :  { %v613_v59 = vsel %vm612_vm7, %v525_v44, %v607_v57 }
 0x382   :  { %v615_v60 = vsel %vm614_vm8, %v613_v59, %v610_v58 }
 0x383   :  { %v617_v61 = vrot.slane %v615_v60, 1  ;;  %v622_v62 = vperm.slane %v615_v60, 0  ;;  %v618_v5 = vrot.slane %v615_v60, 2  ;;  %v619_v6 = vrot.slane %v615_v60, 3 }
 0x384   :  { %v620_v13 = vrot.slane %v615_v60, 4  ;;  %v621_v14 = vrot.slane %v615_v60, 5 }
 0x385   :  { %v623_v1 = vperm.slane %v617_v61, 0  ;;  %v634_v2 = vmul.f32 %v622_v62, %v601_v63  ;;  %v624_v7 = vperm.slane %v618_v5, 0  ;;  %v625_v9 = vperm.slane %v619_v6, 0 }
 0x386   :  { %v626_v15 = vperm.slane %v620_v13, 0  ;;  %v627_v16 = vperm.slane %v621_v14, 0 }
 0x387   :  { %v635_v3 = vmul.f32 %v623_v1, %v601_v63  ;;  %v636_v10 = vmul.f32 %v624_v7, %v601_v63  ;;  %v637_v11 = vmul.f32 %v625_v9, %v601_v63 }
 0x388   :  { %v638_v17 = vmul.f32 %v626_v15, %v601_v63  ;;  %v639_v18 = vmul.f32 %v627_v16, %v601_v63 }
 0x389   :  { %v640_v4 = vpack.c.bf16 %v635_v3, %v634_v2  ;;  %v641_v12 = vpack.c.bf16 %v637_v11, %v636_v10 }
 0x38a   :  { %v642_v19 = vpack.c.bf16 %v639_v18, %v638_v17  ;;  %v595_v18 = vsub.f32 0.0, %v1636_v51 }
 0x38b   :  { %1144 = vmatmul.msk.bf16.vlgmr.msra.gmra.mxu1 %vm204_vm5, %v640_v4 }
 0x39b   :  { %1145 = vmatmul.msk.bf16.gmra.mxu1 %vm204_vm5, %v641_v12 }
 0x3ab   :  { %1146 = vmatmul.msk.bf16.gmra.mxu1 %vm204_vm5, %v642_v19  ;;  %v596_v19 = vmul.f32 1.442695, %v595_v18  ;;  %v1258_v18 = vld [vmem:[%s1739_s15] ss:$0 sm:$0xff] }
 0x3ad   :  { %1273 = vpow2.f32 %v596_v19 }
 0x408   :  { %v673_v20 = vpop.f32.mrf.mxu1 }
 0x409   :  { %v697_v25 = vmul.f32 %v693_v22, %v673_v20 }
 0x40b   :  { %v703_v37 = vmul.f32 %v697_v25, %v690_v30 }
 0x40d   :  { %v705_v39 = vadd.f32 %v703_v37, %v688_v24 }
 0x410   :  { %v675_v21 = vpop.f32.mrf.mxu1 }
 0x411   :  { %v698_v34 = vmul.f32 %v694_v29, %v675_v21 }
 0x413   :  { %v704_v42 = vmul.f32 %v698_v34, %v690_v30 }
 0x415   :  { %v706_v46 = vadd.f32 %v704_v42, %v689_v32 }
 0x418   :  { %v678_v23 = vpop.f32.mrf.mxu1 }
 0x419   :  { %v699_v26 = vmul.f32 %v688_v24, %v678_v23 }
 0x41b   :  { %v701_v28 = vadd.f32 %v699_v26, %v697_v25  ;;  %v1274_v26 = vpop.eup %1273 }
 0x41d   :  { %723 = vst.msk [vmem:[%s1547_s17] sm:$0xff] %vm204_vm5, %v701_v28  ;;  %v598_v28 = vadd.f32 1.0, %v1274_v26 }
 0x420   :  { %v680_v31 = vpop.f32.mrf.mxu1 }
 0x421   :  { %v700_v36 = vmul.f32 %v689_v32, %v680_v31 }
 0x423   :  { %v702_v38 = vadd.f32 %v700_v36, %v698_v34  ;;  %v1255_v36 = vld [vmem:[%s1733_s20] ss:$0 sm:$0xff] }
 0x425   :  { %724 = vst.msk [vmem:[%s1547_s17 + $0x8] sm:$0xff] %vm204_vm5, %v702_v38  ;;  %s1732_s17 = sld [smem:[#allocation17_spill]] }
 0x428   :  { %v683_v40 = vpop.f32.mrf.mxu1 }
 0x429   :  { %v707_v41 = vmul.f32 %v705_v39, %v683_v40 }
 0x42b   :  { %v709_v44 = vsel %vm204_vm5, %v707_v41, 0.0  ;;  %v1196_v20 = vld [vmem:[%s1732_s17 + $0x8] sm:$0xff]  ;;  %v1195_v23 = vld [vmem:[%s1732_s17] sm:$0xff] }
 0x42c   :  { %v710_v43 = vrot.slane %v709_v44, 4  ;;  %854 = vmatpush.bf16.msrb.mxu0 %v1196_v20  ;;  %v1256_v41 = vld [vmem:[%s1734_s27] ss:$0 sm:$0xff] }
 0x42e   :  { %v711_v45 = vadd.f32 %v710_v43, %v709_v44 }
 0x430   :  { %v712_v47 = vrot.slane %v711_v45, 2  ;;  %v685_v35 = vpop.f32.mrf.mxu1  ;;  %855 = vmatpush.bf16.msrb.mxu0 %v1195_v23  ;;  %v1259_v23 = vld [vmem:[%s1741_s18] ss:$0 sm:$0xff] }
 0x431   :  { %v708_v48 = vmul.f32 %v706_v46, %v685_v35 }
 0x432   :  { %v713_v49 = vadd.f32 %v712_v47, %v711_v45 }
 0x433   :  { %v716_v33 = vsel %vm204_vm5, %v708_v48, 0.0 }
 0x434   :  { %v717_v50 = vrot.slane %v716_v33, 4  ;;  %v714_v52 = vrot.slane %v713_v49, 1 }
 0x436   :  { %v718_v53 = vadd.f32 %v717_v50, %v716_v33  ;;  %v715_v55 = vadd.f32 %v714_v52, %v713_v49 }
 0x438   :  { %v719_v54 = vrot.slane %v718_v53, 2  ;;  %v725_v58 = vpack.c.bf16 %v715_v55, %v715_v55 }
 0x43a   :  { %v720_v56 = vadd.f32 %v719_v54, %v718_v53  ;;  %v729_v61 = vunpack.c.l.b16 %v725_v58 }
 0x43c   :  { %v721_v57 = vrot.slane %v720_v56, 1 }
 0x43e   :  { %v722_v59 = vadd.f32 %v721_v57, %v720_v56 }
 0x440   :  { %v726_v60 = vpack.c.bf16 %v722_v59, %v722_v59 }
 0x442   :  { %v730_v62 = vunpack.c.l.b16 %v726_v60 }
 0x444   :  { %v732_v63 = vsel %vm731_vm9, %v730_v62, %v729_v61 }
 0x445   :  { %v733_v1 = vpack.c.b16 %v732_v63, %v732_v63 }
 0x447   :  { %1147 = vmatmul.msk.bf16.vlgmr.msra.gmra.mxu2 %vm204_vm5, %v733_v1 }
 0x4ca   :  { %v746_v2 = vpop.f32.mrf.mxu2 }
 0x4cb   :  { %v750_v3 = vmul.f32 0.125, %v746_v2  ;;  %v1200_v2 = vld [vmem:[%s1735_s4 + $0x8] sm:$0xff] }
 0x4cc   :  { %972 = vmatpush.bf16.msra.mxu3 %v1200_v2 }
 0x4cd   :  { %v752_v4 = vrot.slane %v750_v3, 1  ;;  %v755_v5 = vsub.f32 %v715_v55, %v750_v3  ;;  %v1198_v3 = vld [vmem:[%s1736_s7 + $0x8] sm:$0xff] }
 0x4ce   :  { %934 = vmatpush.bf16.msrb.mxu2 %v1198_v3 }
 0x4cf   :  { %v756_v6 = vsub.f32 %v722_v59, %v752_v4  ;;  %v757_v7 = vmul.f32 %v755_v5, %v755_v5  ;;  %v1197_v4 = vld [vmem:[%s1736_s7] sm:$0xff] }
 0x4d1   :  { %v758_v9 = vmul.f32 %v756_v6, %v756_v6  ;;  %v759_v11 = vpack.c.bf16 %v757_v7, %v757_v7 }
 0x4d2   :  { %v748_v10 = vpop.f32.mrf.mxu2  ;;  %935 = vmatpush.bf16.msrb.mxu2 %v1197_v4 }
 0x4d3   :  { %v760_v12 = vpack.c.bf16 %v758_v9, %v758_v9  ;;  %v763_v14 = vunpack.c.l.b16 %v759_v11  ;;  %v1202_v9 = vld [vmem:[%s1737_s10 + $0x8] sm:$0xff]  ;;  %v1201_v10 = vld [vmem:[%s1737_s10] sm:$0xff] }
 0x4d4   :  { %1007 = vmatpush.bf16.msra.mxu0 %v1202_v9 }
 0x4d5   :  { %v764_v13 = vunpack.c.l.b16 %v760_v12 }
 0x4d7   :  { %v765_v15 = vrot.slane %v764_v13, 7 }
 0x4d8   :  { %1008 = vmatpush.bf16.msra.mxu0 %v1201_v10 }
 0x4d9   :  { %v766_v16 = vsel %vm731_vm9, %v765_v15, %v763_v14 }
 0x4da   :  { %v767_v17 = vpack.c.b16 %v766_v16, %v766_v16  ;;  %v1257_v16 = vld [vmem:[%s1738_s11] ss:$0 sm:$0xff] }
 0x4dc   :  { %1148 = vmatmul.msk.bf16.vlgmr.msrb.gmra.mxu3 %vm204_vm5, %v767_v17 }
 0x55f   :  { %v780_v21 = vpop.f32.mrf.mxu3 }
 0x560   :  { %v784_v22 = vmul.f32 0.125, %v780_v21  ;;  %v894_v21 = vld [vmem:[%s1740_s16] sm:$0x3] }
 0x562   :  { %v785_v24 = vadd.f32 1e-05, %v784_v22 }
 0x564   :  { %1275 = vrsqrt.f32 %v785_v24  ;;  %vm792_vm11 = vweird.f32 %v785_v24 }
 0x565   :  { %1277 = vrcp.f32 %v598_v28 }
 0x567   :  { %v782_v25 = vpop.f32.mrf.mxu3 }
 0x56a   :  { %v1276_v27 = vpop.eup %1275 }
 0x56b   :  { %v787_v29 = vmul.f32 %v1276_v27, %v785_v24  ;;  %vm793_vm10 = vweird.f32 %v1276_v27  ;;  %v1278_v37 = vpop.eup %1277  ;;  %v1260_v24 = vld [vmem:[%s1742_s22] ss:$0 sm:$0xff] }
 0x56c   :  { %vm794_vm12 = vmor %vm792_vm11, %vm793_vm10  ;;  %v600_v42 = vmul.f32 %v1278_v37, %v1636_v51 }
 0x56d   :  { %v788_v30 = vmul.f32 %v1276_v27, %v787_v29 }
 0x56e   :  { %v815_v47 = vrot.slane %v600_v42, 1 }
 0x56f   :  { %v789_v31 = vmul.f32 0.5, %v788_v30 }
 0x571   :  { %v790_v32 = vsub.f32 1.5, %v789_v31 }
 0x573   :  { %v791_v34 = vmul.f32 %v1276_v27, %v790_v32 }
 0x575   :  { %v795_v38 = vsel %vm794_vm12, %v1276_v27, %v791_v34 }
 0x576   :  { %v797_v39 = vrot.slane %v795_v38, 1  ;;  %v800_v40 = vmul.f32 %v795_v38, %v755_v5 }
 0x578   :  { %v801_v44 = vmul.f32 %v797_v39, %v756_v6  ;;  %v806_v43 = vmul.f32 %v1255_v36, %v800_v40 }
 0x57a   :  { %v807_v45 = vmul.f32 %v1255_v36, %v801_v44  ;;  %v812_v46 = vadd.f32 %v1256_v41, %v806_v43 }
 0x57c   :  { %v813_v35 = vadd.f32 %v1256_v41, %v807_v45  ;;  %v818_v48 = vmul.f32 %v812_v46, %v600_v42 }
 0x57e   :  { %v819_v49 = vmul.f32 %v815_v47, %v813_v35  ;;  %v820_v33 = vpack.c.bf16 %v818_v48, %v818_v48 }
 0x580   :  { %v821_v50 = vpack.c.bf16 %v819_v49, %v819_v49  ;;  %v828_v53 = vunpack.c.l.b16 %v820_v33 }
 0x582   :  { %v829_v52 = vunpack.c.l.b16 %v821_v50 }
 0x584   :  { %v830_v54 = vrot.slane %v829_v52, 7 }
 0x586   :  { %v831_v55 = vsel %vm731_vm9, %v830_v54, %v828_v53 }
 0x587   :  { %v832_v56 = vpack.c.b16 %v831_v55, %v831_v55 }
 0x589   :  { %1157 = vmatmul.msk.bf16.vlgmr.msrb.gmra.mxu0 %vm204_vm5, %v832_v56 }
 0x606   :  { %v857_v51 = vpop.f32.mrf.mxu0 }
 0x607   :  { %v1666_v57 = vadd.f32 %v857_v51, %v1550_v0  ;;  %v1199_v0 = vld [vmem:[%s1735_s4] sm:$0xff] }
 0x608   :  { %973 = vmatpush.bf16.msra.mxu3 %v1199_v0 }
 0x609   :  { %v864_v58 = vsel %vm154_vm0, %v1666_v57, 0.0 }
 0x60a   :  { %865 = vadd.xlane.f32.xlu0 %v864_v58 }
 0x60e   :  { %v859_v59 = vpop.f32.mrf.mxu0 }
 0x67d   :  { %v866_v60 = vpop.xlane.xlu0 %865 }
 0x67e   :  { %v867_v61 = vmul.f32 %v866_v60, %v1554_v8 }
 0x680   :  { %v868_v62 = vsub.f32 %v1666_v57, %v867_v61 }
 0x682   :  { %v869_v63 = vmul.f32 %v868_v62, %v868_v62 }
 0x684   :  { %v870_v1 = vsel %vm154_vm0, %v869_v63, 0.0 }
 0x685   :  { %871 = vadd.xlane.f32.xlu1 %v870_v1 }
 0x6f8   :  { %v872_v5 = vpop.xlane.xlu1 %871 }
 0x6f9   :  { %v873_v6 = vmul.f32 %v872_v5, %v1554_v8 }
 0x6fb   :  { %v874_v7 = vadd.f32 1e-05, %v873_v6 }
 0x6fd   :  { %1279 = vrsqrt.f32 %v874_v7  ;;  %vm881_vm14 = vweird.f32 %v874_v7 }
 0x703   :  { %v1280_v11 = vpop.eup %1279 }
 0x704   :  { %v876_v12 = vmul.f32 %v1280_v11, %v874_v7  ;;  %vm882_vm13 = vweird.f32 %v1280_v11 }
 0x705   :  { %vm883_vm15 = vmor %vm881_vm14, %vm882_vm13 }
 0x706   :  { %v877_v13 = vmul.f32 %v1280_v11, %v876_v12 }
 0x708   :  { %v878_v14 = vmul.f32 0.5, %v877_v13 }
 0x70a   :  { %v879_v15 = vsub.f32 1.5, %v878_v14 }
 0x70c   :  { %v880_v8 = vmul.f32 %v1280_v11, %v879_v15 }
 0x70e   :  { %v884_v17 = vsel %vm883_vm15, %v1280_v11, %v880_v8 }
 0x70f   :  { %v885_v19 = vmul.f32 %v884_v17, %v868_v62 }
 0x711   :  { %v889_v20 = vmul.f32 %v1257_v16, %v885_v19 }
 0x713   :  { %v893_v22 = vadd.f32 %v1258_v18, %v889_v20 }
 0x715   :  { %1017 = vst.msk [vmem:[%s1537_s19] sm:$0x3] %vm154_vm0, %v893_v22  ;;  %v895_v25 = vsub.f32 %v894_v21, %v893_v22  ;;  %s1353_s19 = smov [#allocation2]  }
 0x716   :  { %s1024_s23 = sshll.u32 %s1353_s19, 4  ;;  %s1025_s23 = int_to_ptr.vmem [resolvable:$true] %s1024_s23 }
 0x717   :  { %v906_v26 = vmul.f32 %v1259_v23, %v895_v25  ;;  %v900_v27 = vmul.f32 %v1260_v24, %v895_v25 }
 0x719   :  { %v907_v28 = vadd.f32 %v906_v26, %v893_v22  ;;  %v901_v29 = vadd.f32 %v900_v27, %v893_v22 }
 0x71b   :  { %v908_v30 = vpack.c.bf16 %v907_v28, %v907_v28  ;;  %v946_v31 = vpack.c.bf16 %v901_v29, %v901_v29 }
 0x71d   :  { %1166 = vmatmul.msk.bf16.vlgmr.msrb.gmra.mxu2 %vm204_vm5, %v908_v30  ;;  %1175 = vmatmul.msk.bf16.vlgmr.msra.gmra.mxu3 %vm204_vm5, %v946_v31 }
 0x7a0   :  { %v937_v32 = vpop.f32.mrf.mxu2  ;;  %v975_v34 = vpop.f32.mrf.mxu3 }
 0x7a1   :  { %v979_v36 = vmax.f32 %v975_v34, 0.0  ;;  %v941_v41 = vsub.f32 0.0, %v937_v32 }
 0x7a3   :  { %v980_v37 = vmul.f32 %v979_v36, %v979_v36  ;;  %v942_v42 = vmul.f32 1.442695, %v941_v41 }
 0x7a5   :  { %v981_v38 = vpack.c.bf16 %v980_v37, %v980_v37  ;;  %1281 = vpow2.f32 %v942_v42 }
 0x7a7   :  { %1184 = vmatmul.msk.bf16.vlgmr.msra.gmra.mxu0 %vm204_vm5, %v981_v38 }
 0x7a8   :  { %v939_v39 = vpop.f32.mrf.mxu2  ;;  %v977_v40 = vpop.f32.mrf.mxu3 }
 0x7ab   :  { %v1282_v44 = vpop.eup %1281 }
 0x7ac   :  { %v944_v43 = vadd.f32 1.0, %v1282_v44 }
 0x7ae   :  { %1283 = vrcp.f32 %v944_v43 }
 0x7b4   :  { %v1284_v45 = vpop.eup %1283 }
 0x824   :  { %v1010_v46 = vpop.f32.mrf.mxu0 }
 0x825   :  { %v1014_v47 = vmul.f32 %v1284_v45, %v1010_v46 }
 0x827   :  { %v1015_v35 = vadd.f32 %v1014_v47, %v1666_v57 }
 0x829   :  { %1016 = vst.msk [vmem:[#allocation2] sm:$0x3] %vm154_vm0, %v1015_v35 }
 0x82a   :  { %1308 = shalt.err (!%p1305_p4)
}
 0x82b   :  { %1029 = dma.vmem_to_hbm [thread:$0]  %s1025_s23, 32, %s1027_s26, [#allocation3]  }
 0x82c   :  { %v1012_v48 = vpop.f32.mrf.mxu0 }
 0x82d   :  { %1309 = dma.done.wait [#allocation3], 32  }
 0x82e   :  { %1310 = vsyncadd [#allocation3], 4294967264 }
 0x82f   :  { %1046 = vsyncpa [#allocation3], 1 }

</bundles_post_ra>
